<compile_context>
chip_gen: v6e
topology: v6e:2x2x1
jax: 0.10.0
libtpu: 0.0.40
codegen_flags: <defaults>
</compile_context>

<pallas_src>
import jax
import jax.numpy as jnp
from jax import lax
from jax.experimental import pallas as pl
from jax.experimental.pallas import tpu as pltpu


def _cdiv(a, b):
    return (a + b - 1) // b


def _round_up(x, m):
    return _cdiv(x, m) * m


def _make_critic_kernel(mxu_dtype):
    def kernel(x_ref, w1t_ref, b1_ref, w2t_ref, b2_ref, w3t_ref, b3_ref,
               w4_ref, b4_ref, out_ref):
        # Layer 1: contract the feature axis of both operands (W1^T @ x^T)
        # without materializing any transpose (MXU trans-B pattern).
        h = lax.dot_general(
            w1t_ref[...], x_ref[...],
            dimension_numbers=(((1,), (1,)), ((), ())),
            preferred_element_type=jnp.float32)              # (hidden, tb) f32
        h = jnp.maximum(h + b1_ref[...], 0.0)

        # Layer 2: (512, hidden) @ (hidden, tb)
        h = jnp.dot(w2t_ref[...], h.astype(mxu_dtype),
                    preferred_element_type=jnp.float32)
        h = jnp.maximum(h + b2_ref[...], 0.0)

        # Layer 3 (dominant matmul): (128, 512) @ (512, tb)
        h = jnp.dot(w3t_ref[...], h.astype(mxu_dtype),
                    preferred_element_type=jnp.float32)
        h = jnp.maximum(h + b3_ref[...], 0.0)

        # Head (128 -> 1): VPU multiply + sublane reduction (XLU) instead of an
        # N=1 MXU pass; result is lane-dense (1, tb) -> unmasked dense store.
        out_ref[...] = (jnp.sum(h * w4_ref[...], axis=0, keepdims=True)
                        + b4_ref[...])

    return kernel


def critic_forward(obs, act, params, *, block_batch=2048,
                   mxu_dtype=jnp.bfloat16):
    """Run the Critic MLP with a batch-tiled, pipelined Pallas kernel."""
    B, obs_dim = obs.shape
    act_dim = act.shape[1]
    (w1, b1), (w2, b2), (w3, b3), (w4, b4) = params
    hidden = w1.shape[1]
    d2 = w2.shape[1]   # 512
    d3 = w3.shape[1]   # 128
    in_dim = obs_dim + act_dim

    # Weights transposed to (out_features, in_features) so the kernel runs in
    # "batch on lanes" orientation; biases become (out, 1) columns.
    w1t = w1.T.astype(mxu_dtype)                 # (hidden, in_dim)
    w2t = w2.T.astype(mxu_dtype)                 # (512, hidden)
    w3t = w3.T.astype(mxu_dtype)                 # (128, 512)
    w4c = w4.reshape(d3, 1).astype(jnp.float32)  # head stays f32 on VPU/XLU
    b1c = b1.reshape(hidden, 1).astype(jnp.float32)
    b2c = b2.reshape(d2, 1).astype(jnp.float32)
    b3c = b3.reshape(d3, 1).astype(jnp.float32)
    b4c = b4.reshape(1, 1).astype(jnp.float32)

    # Single fused input stream: concat once in the wrapper, cast to the MXU
    # operand dtype (halves streamed bytes on the bf16 path).
    x = jnp.concatenate([obs, act], axis=-1).astype(mxu_dtype)   # (B, in_dim)

    # ---- Batch tiling: tb is a multiple of 128 lanes; keep >=2 grid steps
    # whenever B spans >=2 lane-tiles so v7x megacore sharding engages.
    LANE = 128
    n_tiles = _cdiv(B, LANE)                         # 128-row lane tiles
    max_tiles_per_step = max(1, block_batch // LANE)
    min_steps = 2 if n_tiles >= 2 else 1
    steps = max(_cdiv(n_tiles, max_tiles_per_step), min_steps)
    tiles_per_step = _cdiv(n_tiles, steps)
    tb = tiles_per_step * LANE
    grid_steps = _cdiv(n_tiles, tiles_per_step)
    b_pad = grid_steps * tb

    if b_pad != B:
        x = jnp.pad(x, ((0, b_pad - B), (0, 0)))

    # ---- VMEM budget: double-buffered IO + (double-buffered) resident
    # weights + live f32 intermediates, with margin; clamped to a limit that
    # is safe on every generation (v7x physical VMEM is 64 MiB / TC).
    itemsize = jnp.dtype(mxu_dtype).itemsize
    w_bytes = ((w1t.size + w2t.size + w3t.size) * itemsize
               + (w4c.size + b1c.size + b2c.size + b3c.size + b4c.size) * 4)
    io_bytes = tb * in_dim * itemsize + tb * 4
    live_bytes = tb * (hidden + 2 * d2 + 2 * d3) * 4
    vmem_limit = int(min(max(2 * (w_bytes + io_bytes) + live_bytes + (6 << 20),
                             8 << 20),
                         32 << 20))

    def resident_spec(r, c):
        # Same (only) block at every grid step -> fetched once, VMEM resident.
        # TODO(synk): could use pipeline_mode=pl.Buffered(1) to drop the second
        # buffer; footprint is instead folded into vmem_limit above.
        return pl.BlockSpec((r, c), lambda i: (0, 0))

    out = pl.pallas_call(
        _make_critic_kernel(mxu_dtype),
        out_shape=jax.ShapeDtypeStruct((1, b_pad), jnp.float32),
        grid=(grid_steps,),
        in_specs=[
            pl.BlockSpec((tb, in_dim), lambda i: (i, 0)),   # x (batch-tiled)
            resident_spec(hidden, in_dim),                  # W1^T
            resident_spec(hidden, 1),                       # b1
            resident_spec(d2, hidden),                      # W2^T
            resident_spec(d2, 1),                           # b2
            resident_spec(d3, d2),                          # W3^T
            resident_spec(d3, 1),                           # b3
            resident_spec(d3, 1),                           # W4 as a column
            resident_spec(1, 1),                            # b4
        ],
        out_specs=pl.BlockSpec((1, tb), lambda i: (0, i)),  # lane-dense output
        compiler_params=pltpu.CompilerParams(
            dimension_semantics=("parallel",),   # 2 TCs on v7x; no-op v5e/v6e
            vmem_limit_bytes=vmem_limit,
        ),
    )(x, w1t, b1c, w2t, b2c, w3t, b3c, w4c, b4c)

    # (1, b_pad) lane-dense slab -> (B, 1); row-major order is preserved.
    return out[0, :B][:, None]


def init_critic_params(key, obs_dim, act_dim, hidden_size):
    """Deterministic synthetic init (shapes match the PyTorch module)."""
    dims = [(obs_dim + act_dim, hidden_size),
            (hidden_size, 512),
            (512, 128),
            (128, 1)]
    params = []
    for (fan_in, fan_out) in dims:
        key, kw, kb = jax.random.split(key, 3)
        scale = 1.0 / jnp.sqrt(jnp.float32(fan_in))
        w = jax.random.uniform(kw, (fan_in, fan_out), jnp.float32,
                               minval=-scale, maxval=scale)
        b = jax.random.uniform(kb, (1, fan_out), jnp.float32,
                               minval=-scale, maxval=scale)
        params.append((w, b))
    return params


def critic_reference(obs, act, params):
    """Pure-JAX reference for correctness check."""
    x = jnp.concatenate([obs, act], axis=-1)
    (w1, b1), (w2, b2), (w3, b3), (w4, b4) = params
    x = jnp.maximum(x @ w1 + b1, 0.0)
    x = jnp.maximum(x @ w2 + b2, 0.0)
    x = jnp.maximum(x @ w3 + b3, 0.0)
    return x @ w4 + b4


if __name__ == "__main__":
    obs_dim, act_dim, hidden_size = 16, 8, 32

    key = jax.random.PRNGKey(0)
    key, k_obs, k_act, k_params = jax.random.split(key, 4)
    params = init_critic_params(k_params, obs_dim, act_dim, hidden_size)

    # Small single-tile case (B=8 -> one grid step).
    B = 8
    obs = jax.random.normal(k_obs, (B, obs_dim), jnp.float32)
    act = jax.random.normal(k_act, (B, act_dim), jnp.float32)
    ref = critic_reference(obs, act, params)

    # Default bf16-MXU path (f32 accumulate): relaxed tolerance.
    out_bf16 = jax.block_until_ready(critic_forward(obs, act, params))
    assert out_bf16.shape == (B, 1), out_bf16.shape
    assert jnp.allclose(out_bf16, ref, atol=5e-2, rtol=5e-2), \
        "bf16-MXU path mismatch vs reference"

    # f32-MXU path: tight tolerance.
    out_f32 = jax.block_until_ready(
        critic_forward(obs, act, params, mxu_dtype=jnp.float32))
    assert jnp.allclose(out_f32, ref, atol=1e-4, rtol=1e-4), \
        "f32-MXU path mismatch vs reference"

    # Multi-step grid + batch padding path (B=200 -> tb=128, grid=(2,)).
    key, k_obs2, k_act2 = jax.random.split(key, 3)
    B2 = 200
    obs2 = jax.random.normal(k_obs2, (B2, obs_dim), jnp.float32)
    act2 = jax.random.normal(k_act2, (B2, act_dim), jnp.float32)
    out2 = jax.block_until_ready(
        critic_forward(obs2, act2, params, mxu_dtype=jnp.float32))
    ref2 = critic_reference(obs2, act2, params)
    assert out2.shape == (B2, 1), out2.shape
    assert jnp.allclose(out2, ref2, atol=1e-4, rtol=1e-4), \
        "multi-step grid path mismatch vs reference"

    print("KERNEL_OK")
</pallas_src>

<mosaic_0001>
module attributes {stable_mosaic.version = 11 : i64} {
  func.func @kernel(%arg0: i32, %arg1: memref<128x24xbf16, #tpu.memory_space<vmem>>, %arg2: memref<32x24xbf16, #tpu.memory_space<vmem>>, %arg3: memref<32x1xf32, #tpu.memory_space<vmem>>, %arg4: memref<512x32xbf16, #tpu.memory_space<vmem>>, %arg5: memref<512x1xf32, #tpu.memory_space<vmem>>, %arg6: memref<128x512xbf16, #tpu.memory_space<vmem>>, %arg7: memref<128x1xf32, #tpu.memory_space<vmem>>, %arg8: memref<128x1xf32, #tpu.memory_space<vmem>>, %arg9: memref<1x1xf32, #tpu.memory_space<vmem>>, %arg10: memref<1x128xf32, #tpu.memory_space<vmem>>) attributes {dimension_semantics = [#tpu.dimension_semantics<parallel>], iteration_bounds = array<i64: 1>, scalar_prefetch = 0 : i64, scratch_operands = 0 : i64, tpu.core_type = #tpu.core_type<tc>, window_params = [{transform_indices = @transform_0, window_bounds = array<i64: 128, 24>}, {pipeline_mode = #tpu.pipeline_mode<synchronous>, transform_indices = @transform_1, window_bounds = array<i64: 32, 24>}, {pipeline_mode = #tpu.pipeline_mode<synchronous>, transform_indices = @transform_2, window_bounds = array<i64: 32, 1>}, {pipeline_mode = #tpu.pipeline_mode<synchronous>, transform_indices = @transform_3, window_bounds = array<i64: 512, 32>}, {pipeline_mode = #tpu.pipeline_mode<synchronous>, transform_indices = @transform_4, window_bounds = array<i64: 512, 1>}, {pipeline_mode = #tpu.pipeline_mode<synchronous>, transform_indices = @transform_5, window_bounds = array<i64: 128, 512>}, {pipeline_mode = #tpu.pipeline_mode<synchronous>, transform_indices = @transform_6, window_bounds = array<i64: 128, 1>}, {pipeline_mode = #tpu.pipeline_mode<synchronous>, transform_indices = @transform_7, window_bounds = array<i64: 128, 1>}, {pipeline_mode = #tpu.pipeline_mode<synchronous>, transform_indices = @transform_8, window_bounds = array<i64: 1, 1>}, {transform_indices = @transform_9, window_bounds = array<i64: 1, 128>}]} {
    %c0 = arith.constant 0 : index
    %c0_0 = arith.constant 0 : index
    %0 = vector.load %arg2[%c0, %c0_0] : memref<32x24xbf16, #tpu.memory_space<vmem>>, vector<32x24xbf16>
    %c0_1 = arith.constant 0 : index
    %c0_2 = arith.constant 0 : index
    %1 = vector.load %arg1[%c0_1, %c0_2] : memref<128x24xbf16, #tpu.memory_space<vmem>>, vector<128x24xbf16>
    %cst = arith.constant dense<0.000000e+00> : vector<32x128xf32>
    %2 = tpu.matmul %0, %1, %cst {dimension_numbers = #tpu.dot_dimension_numbers<[1], [1], [0], [0], [0, 0, 1, 0], [], []>} : vector<32x24xbf16>, vector<128x24xbf16>, vector<32x128xf32> -> vector<32x128xf32>
    %c0_3 = arith.constant 0 : index
    %c0_4 = arith.constant 0 : index
    %3 = vector.load %arg3[%c0_3, %c0_4] : memref<32x1xf32, #tpu.memory_space<vmem>>, vector<32x1xf32>
    %4 = vector.broadcast %3 : vector<32x1xf32> to vector<32x128xf32>
    %5 = arith.addf %2, %4 : vector<32x128xf32>
    %cst_5 = arith.constant 0.000000e+00 : f32
    %6 = vector.broadcast %cst_5 : f32 to vector<32x128xf32>
    %7 = arith.maximumf %5, %6 : vector<32x128xf32>
    %c0_6 = arith.constant 0 : index
    %c0_7 = arith.constant 0 : index
    %8 = vector.load %arg4[%c0_6, %c0_7] : memref<512x32xbf16, #tpu.memory_space<vmem>>, vector<512x32xbf16>
    %9 = arith.truncf %7 : vector<32x128xf32> to vector<32x128xbf16>
    %cst_8 = arith.constant dense<0.000000e+00> : vector<512x128xf32>
    %10 = tpu.matmul %8, %9, %cst_8 {dimension_numbers = #tpu.dot_dimension_numbers<[1], [0], [0], [1], [0, 0, 1, 1], [], []>} : vector<512x32xbf16>, vector<32x128xbf16>, vector<512x128xf32> -> vector<512x128xf32>
    %c0_9 = arith.constant 0 : index
    %c0_10 = arith.constant 0 : index
    %11 = vector.load %arg5[%c0_9, %c0_10] : memref<512x1xf32, #tpu.memory_space<vmem>>, vector<512x1xf32>
    %12 = vector.broadcast %11 : vector<512x1xf32> to vector<512x128xf32>
    %13 = arith.addf %10, %12 : vector<512x128xf32>
    %cst_11 = arith.constant 0.000000e+00 : f32
    %14 = vector.broadcast %cst_11 : f32 to vector<512x128xf32>
    %15 = arith.maximumf %13, %14 : vector<512x128xf32>
    %c0_12 = arith.constant 0 : index
    %c0_13 = arith.constant 0 : index
    %16 = vector.load %arg6[%c0_12, %c0_13] : memref<128x512xbf16, #tpu.memory_space<vmem>>, vector<128x512xbf16>
    %17 = arith.truncf %15 : vector<512x128xf32> to vector<512x128xbf16>
    %cst_14 = arith.constant dense<0.000000e+00> : vector<128x128xf32>
    %18 = tpu.matmul %16, %17, %cst_14 {dimension_numbers = #tpu.dot_dimension_numbers<[1], [0], [0], [1], [0, 0, 1, 1], [], []>} : vector<128x512xbf16>, vector<512x128xbf16>, vector<128x128xf32> -> vector<128x128xf32>
    %c0_15 = arith.constant 0 : index
    %c0_16 = arith.constant 0 : index
    %19 = vector.load %arg7[%c0_15, %c0_16] : memref<128x1xf32, #tpu.memory_space<vmem>>, vector<128x1xf32>
    %20 = vector.broadcast %19 : vector<128x1xf32> to vector<128x128xf32>
    %21 = arith.addf %18, %20 : vector<128x128xf32>
    %cst_17 = arith.constant 0.000000e+00 : f32
    %22 = vector.broadcast %cst_17 : f32 to vector<128x128xf32>
    %23 = arith.maximumf %21, %22 : vector<128x128xf32>
    %c0_18 = arith.constant 0 : index
    %c0_19 = arith.constant 0 : index
    %24 = vector.load %arg8[%c0_18, %c0_19] : memref<128x1xf32, #tpu.memory_space<vmem>>, vector<128x1xf32>
    %25 = vector.broadcast %24 : vector<128x1xf32> to vector<128x128xf32>
    %26 = arith.mulf %23, %25 : vector<128x128xf32>
    %cst_20 = arith.constant dense<0.000000e+00> : vector<128xf32>
    %27 = vector.multi_reduction <add>, %26, %cst_20 [0] : vector<128x128xf32> to vector<128xf32>
    %28 = vector.shape_cast %27 : vector<128xf32> to vector<1x128xf32>
    %c0_21 = arith.constant 0 : index
    %c0_22 = arith.constant 0 : index
    %29 = vector.load %arg9[%c0_21, %c0_22] : memref<1x1xf32, #tpu.memory_space<vmem>>, vector<1x1xf32>
    %30 = vector.broadcast %29 : vector<1x1xf32> to vector<1x128xf32>
    %31 = arith.addf %28, %30 : vector<1x128xf32>
    %c0_23 = arith.constant 0 : index
    %c0_24 = arith.constant 0 : index
    %32 = vector.load %arg10[%c0_23, %c0_24] : memref<1x128xf32, #tpu.memory_space<vmem>>, vector<1x128xf32>
    tpu.vector_store %arg10[%c0_23, %c0_24], %31 {strides = array<i32>} : memref<1x128xf32, #tpu.memory_space<vmem>>, vector<1x128xf32>,
    return
  }
  func.func @transform_0(%arg0: i32) -> (i32, i32) {
    %c0_i32 = arith.constant 0 : i32
    %c0_i32_0 = arith.constant 0 : i32
    return %arg0, %c0_i32 : i32, i32
  }
  func.func @transform_1(%arg0: i32) -> (i32, i32) {
    %c0_i32 = arith.constant 0 : i32
    %c0_i32_0 = arith.constant 0 : i32
    %c0_i32_1 = arith.constant 0 : i32
    return %c0_i32, %c0_i32_0 : i32, i32
  }
  func.func @transform_2(%arg0: i32) -> (i32, i32) {
    %c0_i32 = arith.constant 0 : i32
    %c0_i32_0 = arith.constant 0 : i32
    %c0_i32_1 = arith.constant 0 : i32
    return %c0_i32, %c0_i32_0 : i32, i32
  }
  func.func @transform_3(%arg0: i32) -> (i32, i32) {
    %c0_i32 = arith.constant 0 : i32
    %c0_i32_0 = arith.constant 0 : i32
    %c0_i32_1 = arith.constant 0 : i32
    return %c0_i32, %c0_i32_0 : i32, i32
  }
  func.func @transform_4(%arg0: i32) -> (i32, i32) {
    %c0_i32 = arith.constant 0 : i32
    %c0_i32_0 = arith.constant 0 : i32
    %c0_i32_1 = arith.constant 0 : i32
    return %c0_i32, %c0_i32_0 : i32, i32
  }
  func.func @transform_5(%arg0: i32) -> (i32, i32) {
    %c0_i32 = arith.constant 0 : i32
    %c0_i32_0 = arith.constant 0 : i32
    %c0_i32_1 = arith.constant 0 : i32
    return %c0_i32, %c0_i32_0 : i32, i32
  }
  func.func @transform_6(%arg0: i32) -> (i32, i32) {
    %c0_i32 = arith.constant 0 : i32
    %c0_i32_0 = arith.constant 0 : i32
    %c0_i32_1 = arith.constant 0 : i32
    return %c0_i32, %c0_i32_0 : i32, i32
  }
  func.func @transform_7(%arg0: i32) -> (i32, i32) {
    %c0_i32 = arith.constant 0 : i32
    %c0_i32_0 = arith.constant 0 : i32
    %c0_i32_1 = arith.constant 0 : i32
    return %c0_i32, %c0_i32_0 : i32, i32
  }
  func.func @transform_8(%arg0: i32) -> (i32, i32) {
    %c0_i32 = arith.constant 0 : i32
    %c0_i32_0 = arith.constant 0 : i32
    %c0_i32_1 = arith.constant 0 : i32
    return %c0_i32, %c0_i32_0 : i32, i32
  }
  func.func @transform_9(%arg0: i32) -> (i32, i32) {
    %c0_i32 = arith.constant 0 : i32
    %c0_i32_0 = arith.constant 0 : i32
    return %c0_i32, %arg0 : i32, i32
  }
}

</mosaic_0001>

<bundles_post_ra>
// kernel: tpu_custom_call.1
= control target key start
LH: loop header
LB: loop body
LE: loop exit
PB: predicated region body
PF: predicated region fallthrough
CT: control target
= control target key end

     0   :  { %s3461_s0 = inlined_call_operand.vmem [shape: bf16[128,24], index: 0, kind: input, shape index: {}]   ;;  %s3462_s1 = inlined_call_operand.vmem [shape: bf16[32,24], index: 1, kind: input, shape index: {}]   ;;  %s3463_s2 = inlined_call_operand.vmem [shape: f32[32,1], index: 2, kind: input, shape index: {}]   ;;  %s3464_s3 = inlined_call_operand.vmem [shape: bf16[512,32], index: 3, kind: input, shape index: {}]   ;;  %s3465_s4 = inlined_call_operand.vmem [shape: f32[512,1], index: 4, kind: input, shape index: {}]   ;;  %s3466_s5 = inlined_call_operand.vmem [shape: bf16[128,512], index: 5, kind: input, shape index: {}]   ;;  %s3467_s6 = inlined_call_operand.vmem [shape: f32[128,1], index: 6, kind: input, shape index: {}]   ;;  %s3468_s7 = inlined_call_operand.vmem [shape: f32[128,1], index: 7, kind: input, shape index: {}]   ;;  %s3469_s8 = inlined_call_operand.<no memory space> [shape: f32[1,1], index: 8, kind: input, shape index: {}]   ;;  %s3470_s9 = inlined_call_operand.hbm [shape: f32[1,128], index: 9, kind: output, shape index: {}]  }
   0x1   :  { %v14_v0 = vstv %s3469_s8 }
   0x2   :  { %15 = vst [vmem:[#allocation2] sm:$0x1] %v14_v0 }
   0x3   :  { %v58_v1 = vld [vmem:[%s3463_s2 + $0x10] sm:$0xff]  ;;  %v56_v2 = vld [vmem:[%s3463_s2] sm:$0xff]  ;;  %vm130_vm0 = vcmask 195584   ;;  %v2459_v3 = vmov 0   ;;  %v2347_v4 = vld [vmem:[%s3461_s0 + $0x38] sm:$0xff]  }
   0x4   :  { %2346 = vset.pattern.permute.xlu1 %v2459_v3  ;;  %2345 = vset.pattern.permute.xlu0 %v2459_v3  ;;  %v59_v5 = vld [vmem:[%s3463_s2 + $0x18] sm:$0xff]  ;;  %v57_v6 = vld [vmem:[%s3463_s2 + $0x8] sm:$0xff]  ;;  %v159_v7 = vsel %vm130_vm0, %v2347_v4, 0  ;;  %v2348_v8 = vld [vmem:[%s3461_s0 + $0x30] sm:$0xff]  }
   0x5   :  { %72 = vperm.xlu0 %2345, %v58_v1   ;;  %62 = vperm.xlu1 %2346, %v56_v2   ;;  %v280_v9 = vld [vmem:[%s3465_s4] sm:$0xff]  ;;  %v281_v10 = vld [vmem:[%s3465_s4 + $0x8] sm:$0xff]  ;;  %v156_v11 = vsel %vm130_vm0, %v2348_v8, 0  ;;  %v310_v13 = vld [vmem:[%s3465_s4 + $0xf0] sm:$0xff] }
   0x6   :  { %2335 = vmatprep.subr.msk.bf16.mxu0 %vm130_vm0, %v2347_v4  ;;  %v2349_v12 = vld [vmem:[%s3461_s0 + $0x28] sm:$0xff]   ;;  %v311_v14 = vld [vmem:[%s3465_s4 + $0xf8] sm:$0xff]  ;;  %v294_v15 = vld [vmem:[%s3465_s4 + $0x70] sm:$0xff] }
   0x7   :  { %2244 = vmatpush3.bf16.xpose.msra.mxu0 %v159_v7  ;;  %v295_v16 = vld [vmem:[%s3465_s4 + $0x78] sm:$0xff]  ;;  %v153_v17 = vsel %vm130_vm0, %v2349_v12, 0  ;;  %v2350_v18 = vld [vmem:[%s3461_s0 + $0x20] sm:$0xff]   ;;  %v342_v19 = vld [vmem:[%s3465_s4 + $0x1f0] sm:$0xff] }
   0x8   :  { %2336 = vmatprep.subr.msk.bf16.mxu0 %vm130_vm0, %v2348_v8  ;;  %v343_v20 = vld [vmem:[%s3465_s4 + $0x1f8] sm:$0xff]  ;;  %v2355_v21 = vld [vmem:[%s3462_s1] sm:$0xff]   ;;  %v326_v22 = vld [vmem:[%s3465_s4 + $0x170] sm:$0xff]  ;;  %v150_v24 = vsel %vm130_vm0, %v2350_v18, 0 }
   0x9   :  { %77 = vperm.xlu0 %2345, %v59_v5   ;;  %67 = vperm.xlu1 %2346, %v57_v6   ;;  %v327_v23 = vld [vmem:[%s3465_s4 + $0x178] sm:$0xff]  ;;  %v308_v26 = vld [vmem:[%s3465_s4 + $0xe0] sm:$0xff]  ;;  %v309_v27 = vld [vmem:[%s3465_s4 + $0xe8] sm:$0xff] }
   0xa   :  { %2259 = vmatprep.mubr.msk.bf16.mxu0 %vm130_vm0, %v2355_v21  ;;  %v2351_v25 = vld [vmem:[%s3461_s0 + $0x18] sm:$0xff]   ;;  %v292_v28 = vld [vmem:[%s3465_s4 + $0x60] sm:$0xff]  ;;  %v293_v29 = vld [vmem:[%s3465_s4 + $0x68] sm:$0xff] }
   0xb   :  { %v147_v30 = vsel %vm130_vm0, %v2351_v25, 0  ;;  %v2352_v31 = vld [vmem:[%s3461_s0 + $0x10] sm:$0xff]   ;;  %v340_v32 = vld [vmem:[%s3465_s4 + $0x1e0] sm:$0xff]  ;;  %v341_v33 = vld [vmem:[%s3465_s4 + $0x1e8] sm:$0xff] }
   0xc   :  { %v324_v34 = vld [vmem:[%s3465_s4 + $0x160] sm:$0xff]  ;;  %v325_v35 = vld [vmem:[%s3465_s4 + $0x168] sm:$0xff]  ;;  %v144_v36 = vsel %vm130_vm0, %v2352_v31, 0  ;;  %v306_v37 = vld [vmem:[%s3465_s4 + $0xd0] sm:$0xff] }
   0xd   :  { %346 = vperm.xlu0 %2345, %v280_v9   ;;  %351 = vperm.xlu1 %2346, %v281_v10   ;;  %v2353_v38 = vld [vmem:[%s3461_s0 + $0x8] sm:$0xff]   ;;  %v307_v39 = vld [vmem:[%s3465_s4 + $0xd8] sm:$0xff]  ;;  %v290_v40 = vld [vmem:[%s3465_s4 + $0x50] sm:$0xff] }
   0xe   :  { %v291_v41 = vld [vmem:[%s3465_s4 + $0x58] sm:$0xff]  ;;  %v141_v42 = vsel %vm130_vm0, %v2353_v38, 0  ;;  %v338_v43 = vld [vmem:[%s3465_s4 + $0x1d0] sm:$0xff]  ;;  %v2354_v44 = vld [vmem:[%s3461_s0] sm:$0xff]  }
   0xf   :  { %2246 = vmatpush3.bf16.xpose.msra.mxu0 %v156_v11  ;;  %v339_v45 = vld [vmem:[%s3465_s4 + $0x1d8] sm:$0xff]  ;;  %v322_v46 = vld [vmem:[%s3465_s4 + $0x150] sm:$0xff]  ;;  %v138_v48 = vsel %vm130_vm0, %v2354_v44, 0  ;;  %v304_v49 = vld [vmem:[%s3465_s4 + $0xc0] sm:$0xff] }
  0x10   :  { %2337 = vmatprep.subr.msk.bf16.mxu0 %vm130_vm0, %v2349_v12  ;;  %v323_v47 = vld [vmem:[%s3465_s4 + $0x158] sm:$0xff]  ;;  %v305_v50 = vld [vmem:[%s3465_s4 + $0xc8] sm:$0xff]  ;;  %v288_v51 = vld [vmem:[%s3465_s4 + $0x40] sm:$0xff] }
  0x11   :  { %496 = vperm.xlu0 %2345, %v310_v13   ;;  %501 = vperm.xlu1 %2346, %v311_v14   ;;  %v289_v52 = vld [vmem:[%s3465_s4 + $0x48] sm:$0xff]  ;;  %v336_v54 = vld [vmem:[%s3465_s4 + $0x1c0] sm:$0xff]  ;;  %v302_v58 = vld [vmem:[%s3465_s4 + $0xb0] sm:$0xff] }
  0x12   :  { %v2356_v53 = vld [vmem:[%s3462_s1 + $0x8] sm:$0xff]   ;;  %v320_v56 = vld [vmem:[%s3465_s4 + $0x140] sm:$0xff]  ;;  %v303_v59 = vld [vmem:[%s3465_s4 + $0xb8] sm:$0xff] }
  0x13   :  { %v337_v55 = vld [vmem:[%s3465_s4 + $0x1c8] sm:$0xff] }
  0x14   :  { %v321_v57 = vld [vmem:[%s3465_s4 + $0x148] sm:$0xff] }
  0x15   :  { %416 = vperm.xlu0 %2345, %v294_v15   ;;  %421 = vperm.xlu1 %2346, %v295_v16  }
  0x17   :  { %2248 = vmatpush3.bf16.xpose.msra.mxu0 %v153_v17 }
  0x18   :  { %2338 = vmatprep.subr.msk.bf16.mxu0 %vm130_vm0, %v2350_v18 }
  0x19   :  { %656 = vperm.xlu0 %2345, %v342_v19   ;;  %661 = vperm.xlu1 %2346, %v343_v20  }
  0x1d   :  { %576 = vperm.xlu0 %2345, %v326_v22   ;;  %581 = vperm.xlu1 %2346, %v327_v23  }
  0x1f   :  { %2250 = vmatpush3.bf16.xpose.msra.mxu0 %v150_v24 }
  0x20   :  { %2339 = vmatprep.subr.msk.bf16.mxu0 %vm130_vm0, %v2351_v25 }
  0x21   :  { %486 = vperm.xlu0 %2345, %v308_v26   ;;  %491 = vperm.xlu1 %2346, %v309_v27  }
  0x25   :  { %406 = vperm.xlu0 %2345, %v292_v28   ;;  %411 = vperm.xlu1 %2346, %v293_v29  }
  0x27   :  { %2252 = vmatpush3.bf16.xpose.msra.mxu0 %v147_v30 }
  0x28   :  { %2340 = vmatprep.subr.msk.bf16.mxu0 %vm130_vm0, %v2352_v31 }
  0x29   :  { %646 = vperm.xlu0 %2345, %v340_v32   ;;  %651 = vperm.xlu1 %2346, %v341_v33  }
  0x2d   :  { %566 = vperm.xlu0 %2345, %v324_v34   ;;  %571 = vperm.xlu1 %2346, %v325_v35  }
  0x2f   :  { %2254 = vmatpush3.bf16.xpose.msra.mxu0 %v144_v36 }
  0x30   :  { %2341 = vmatprep.subr.msk.bf16.mxu0 %vm130_vm0, %v2353_v38 }
  0x31   :  { %476 = vperm.xlu0 %2345, %v306_v37   ;;  %481 = vperm.xlu1 %2346, %v307_v39  }
  0x35   :  { %396 = vperm.xlu0 %2345, %v290_v40   ;;  %401 = vperm.xlu1 %2346, %v291_v41  }
  0x37   :  { %2256 = vmatpush3.bf16.xpose.msra.mxu0 %v141_v42 }
  0x38   :  { %2342 = vmatprep.subr.msk.bf16.mxu0 %vm130_vm0, %v2354_v44 }
  0x39   :  { %636 = vperm.xlu0 %2345, %v338_v43   ;;  %641 = vperm.xlu1 %2346, %v339_v45  }
  0x3d   :  { %556 = vperm.xlu0 %2345, %v322_v46   ;;  %561 = vperm.xlu1 %2346, %v323_v47  }
  0x3f   :  { %2258 = vmatpush3.bf16.xpose.msra.mxu0 %v138_v48 }
  0x41   :  { %466 = vperm.xlu0 %2345, %v304_v49   ;;  %471 = vperm.xlu1 %2346, %v305_v50  }
  0x45   :  { %386 = vperm.xlu0 %2345, %v288_v51   ;;  %391 = vperm.xlu1 %2346, %v289_v52  }
  0x46   :  { %2260 = vmatmul.mubr.msk.bf16.vlgmr.msra.gmra.mxu0 %vm130_vm0, %v2356_v53 }
  0x49   :  { %626 = vperm.xlu0 %2345, %v336_v54   ;;  %631 = vperm.xlu1 %2346, %v337_v55  }
  0x4d   :  { %546 = vperm.xlu0 %2345, %v320_v56   ;;  %551 = vperm.xlu1 %2346, %v321_v57  }
  0x4e   :  { %16 = vsyncpa [#allocation4], 0  ;;  %v286_v60 = vld [vmem:[%s3465_s4 + $0x30] sm:$0xff]  ;;  %v287_v61 = vld [vmem:[%s3465_s4 + $0x38] sm:$0xff]  ;;  %vm824_vm1 = vcmask 261120  }
  0x4f   :  { %v334_v62 = vld [vmem:[%s3465_s4 + $0x1b0] sm:$0xff]  ;;  %v335_v63 = vld [vmem:[%s3465_s4 + $0x1b8] sm:$0xff]  ;;  %v300_v2 = vld [vmem:[%s3465_s4 + $0xa0] sm:$0xff] }
  0x50   :  { %v318_v0 = vld [vmem:[%s3465_s4 + $0x130] sm:$0xff]  ;;  %v319_v1 = vld [vmem:[%s3465_s4 + $0x138] sm:$0xff]  ;;  %v301_v3 = vld [vmem:[%s3465_s4 + $0xa8] sm:$0xff] }
  0x51   :  { %456 = vperm.xlu0 %2345, %v302_v58   ;;  %461 = vperm.xlu1 %2346, %v303_v59   ;;  %v284_v4 = vld [vmem:[%s3465_s4 + $0x20] sm:$0xff]  ;;  %v285_v5 = vld [vmem:[%s3465_s4 + $0x28] sm:$0xff]  ;;  %v298_v10 = vld [vmem:[%s3465_s4 + $0x90] sm:$0xff] }
  0x52   :  { %v332_v6 = vld [vmem:[%s3465_s4 + $0x1a0] sm:$0xff]  ;;  %v333_v7 = vld [vmem:[%s3465_s4 + $0x1a8] sm:$0xff]  ;;  %v299_v11 = vld [vmem:[%s3465_s4 + $0x98] sm:$0xff] }
  0x53   :  { %v316_v8 = vld [vmem:[%s3465_s4 + $0x120] sm:$0xff]  ;;  %v317_v9 = vld [vmem:[%s3465_s4 + $0x128] sm:$0xff]  ;;  %v282_v12 = vld [vmem:[%s3465_s4 + $0x10] sm:$0xff] }
  0x54   :  { %v283_v13 = vld [vmem:[%s3465_s4 + $0x18] sm:$0xff]  ;;  %v330_v14 = vld [vmem:[%s3465_s4 + $0x190] sm:$0xff]  ;;  %v296_v18 = vld [vmem:[%s3465_s4 + $0x80] sm:$0xff] }
  0x55   :  { %376 = vperm.xlu0 %2345, %v286_v60   ;;  %381 = vperm.xlu1 %2346, %v287_v61   ;;  %v331_v15 = vld [vmem:[%s3465_s4 + $0x198] sm:$0xff]  ;;  %v314_v16 = vld [vmem:[%s3465_s4 + $0x110] sm:$0xff]  ;;  %v297_v19 = vld [vmem:[%s3465_s4 + $0x88] sm:$0xff] }
  0x56   :  { %v315_v17 = vld [vmem:[%s3465_s4 + $0x118] sm:$0xff]  ;;  %v328_v20 = vld [vmem:[%s3465_s4 + $0x180] sm:$0xff]  ;;  %v329_v21 = vld [vmem:[%s3465_s4 + $0x188] sm:$0xff] }
  0x57   :  { %v312_v22 = vld [vmem:[%s3465_s4 + $0x100] sm:$0xff]  ;;  %v313_v23 = vld [vmem:[%s3465_s4 + $0x108] sm:$0xff]  ;;  %v1340_v26 = vld [vmem:[%s3467_s6 + $0x10] sm:$0xff] }
  0x58   :  { %v1338_v24 = vld [vmem:[%s3467_s6] sm:$0xff]  ;;  %v1339_v25 = vld [vmem:[%s3467_s6 + $0x8] sm:$0xff]  ;;  %v1341_v27 = vld [vmem:[%s3467_s6 + $0x18] sm:$0xff] }
  0x59   :  { %616 = vperm.xlu0 %2345, %v334_v62   ;;  %621 = vperm.xlu1 %2346, %v335_v63   ;;  %v1342_v28 = vld [vmem:[%s3467_s6 + $0x20] sm:$0xff]  ;;  %v1343_v29 = vld [vmem:[%s3467_s6 + $0x28] sm:$0xff]  ;;  %v1806_v34 = vld [vmem:[%s3468_s7 + $0x10] sm:$0xff] }
  0x5a   :  { %v1804_v30 = vld [vmem:[%s3468_s7] sm:$0xff]  ;;  %v1805_v31 = vld [vmem:[%s3468_s7 + $0x8] sm:$0xff]  ;;  %v1344_v35 = vld [vmem:[%s3467_s6 + $0x30] sm:$0xff] }
  0x5b   :  { %v2357_v32 = vld [vmem:[%s3464_s3 + $0x40] sm:$0xff]   ;;  %v1807_v36 = vld [vmem:[%s3468_s7 + $0x18] sm:$0xff]  ;;  %v1809_v40 = vld [vmem:[%s3468_s7 + $0x28] sm:$0xff] }
  0x5c   :  { %v2358_v33 = vld [vmem:[%s3464_s3] sm:$0xff]   ;;  %2283 = vmatprep.mubr.msk.bf16.mxu1 %vm824_vm1, %v2357_v32  ;;  %v1345_v37 = vld [vmem:[%s3467_s6 + $0x38] sm:$0xff]  ;;  %v1347_v41 = vld [vmem:[%s3467_s6 + $0x48] sm:$0xff] }
  0x5d   :  { %536 = vperm.xlu0 %2345, %v318_v0   ;;  %541 = vperm.xlu1 %2346, %v319_v1   ;;  %v1808_v38 = vld [vmem:[%s3468_s7 + $0x20] sm:$0xff]  ;;  %v1810_v42 = vld [vmem:[%s3468_s7 + $0x30] sm:$0xff]  ;;  %v1811_v44 = vld [vmem:[%s3468_s7 + $0x38] sm:$0xff] }
  0x5e   :  { %2267 = vmatprep.mubr.msk.bf16.mxu0 %vm824_vm1, %v2358_v33  ;;  %v1346_v39 = vld [vmem:[%s3467_s6 + $0x40] sm:$0xff]  ;;  %v1348_v43 = vld [vmem:[%s3467_s6 + $0x50] sm:$0xff]  ;;  %v1349_v45 = vld [vmem:[%s3467_s6 + $0x58] sm:$0xff] }
  0x5f   :  { %v1812_v46 = vld [vmem:[%s3468_s7 + $0x40] sm:$0xff]  ;;  %v1813_v48 = vld [vmem:[%s3468_s7 + $0x48] sm:$0xff]  ;;  %v1814_v50 = vld [vmem:[%s3468_s7 + $0x50] sm:$0xff] }
  0x60   :  { %v1350_v47 = vld [vmem:[%s3467_s6 + $0x60] sm:$0xff]  ;;  %v1351_v49 = vld [vmem:[%s3467_s6 + $0x68] sm:$0xff]  ;;  %v1352_v51 = vld [vmem:[%s3467_s6 + $0x70] sm:$0xff] }
  0x61   :  { %446 = vperm.xlu0 %2345, %v300_v2   ;;  %451 = vperm.xlu1 %2346, %v301_v3   ;;  %v1815_v52 = vld [vmem:[%s3468_s7 + $0x58] sm:$0xff]  ;;  %v1816_v54 = vld [vmem:[%s3468_s7 + $0x60] sm:$0xff]  ;;  %v1817_v55 = vld [vmem:[%s3468_s7 + $0x68] sm:$0xff] }
  0x62   :  { %v1353_v53 = vld [vmem:[%s3467_s6 + $0x78] sm:$0xff]  ;;  %v1818_v56 = vld [vmem:[%s3468_s7 + $0x70] sm:$0xff]  ;;  %v1937_v60 = vld [vmem:[#allocation2] sm:$0x1] }
  0x63   :  { %v1819_v57 = vld [vmem:[%s3468_s7 + $0x78] sm:$0xff] }
  0x65   :  { %366 = vperm.xlu0 %2345, %v284_v4   ;;  %371 = vperm.xlu1 %2346, %v285_v5  }
  0x69   :  { %606 = vperm.xlu0 %2345, %v332_v6   ;;  %611 = vperm.xlu1 %2346, %v333_v7  }
  0x6d   :  { %526 = vperm.xlu0 %2345, %v316_v8   ;;  %531 = vperm.xlu1 %2346, %v317_v9  }
  0x71   :  { %436 = vperm.xlu0 %2345, %v298_v10   ;;  %441 = vperm.xlu1 %2346, %v299_v11  }
  0x75   :  { %356 = vperm.xlu0 %2345, %v282_v12   ;;  %361 = vperm.xlu1 %2346, %v283_v13   ;;  %v2359_v13 = vld [vmem:[%s3464_s3 + $0x8] sm:$0xff]  }
  0x79   :  { %596 = vperm.xlu0 %2345, %v330_v14   ;;  %601 = vperm.xlu1 %2346, %v331_v15   ;;  %v2360_v14 = vld [vmem:[%s3464_s3 + $0x48] sm:$0xff]   ;;  %v2361_v15 = vld [vmem:[%s3464_s3 + $0x10] sm:$0xff]  }
  0x7d   :  { %516 = vperm.xlu0 %2345, %v314_v16   ;;  %521 = vperm.xlu1 %2346, %v315_v17   ;;  %v2362_v16 = vld [vmem:[%s3464_s3 + $0x50] sm:$0xff]   ;;  %v2363_v17 = vld [vmem:[%s3464_s3 + $0x18] sm:$0xff]  }
  0x80   :  { %v73_v58 = vpop.permute.xlu0 %72  ;;  %v63_v59 = vpop.permute.xlu1 %62 }
  0x81   :  { %426 = vperm.xlu0 %2345, %v296_v18   ;;  %431 = vperm.xlu1 %2346, %v297_v19   ;;  %v2364_v18 = vld [vmem:[%s3464_s3 + $0x58] sm:$0xff]   ;;  %v2365_v19 = vld [vmem:[%s3464_s3 + $0x20] sm:$0xff]  }
  0x84   :  { %v78_v61 = vpop.permute.xlu0 %77  ;;  %v68_v4 = vpop.permute.xlu1 %67 }
  0x85   :  { %586 = vperm.xlu0 %2345, %v328_v20   ;;  %591 = vperm.xlu1 %2346, %v329_v21   ;;  %v2366_v20 = vld [vmem:[%s3464_s3 + $0x60] sm:$0xff]   ;;  %v2367_v21 = vld [vmem:[%s3464_s3 + $0x28] sm:$0xff]  }
  0x88   :  { %v2945_v32 = vpop.permute.xlu0 %346  ;;  %v2948_v33 = vpop.permute.xlu1 %351 }
  0x89   :  { %506 = vperm.xlu0 %2345, %v312_v22   ;;  %511 = vperm.xlu1 %2346, %v313_v23   ;;  %v2368_v22 = vld [vmem:[%s3464_s3 + $0x68] sm:$0xff]   ;;  %v2369_v23 = vld [vmem:[%s3464_s3 + $0x30] sm:$0xff]   ;;  %3471 = vst [vmem:[#allocation6_spill] sm:$0xff] %v2945_v32  ;;  %3472 = vst [vmem:[#allocation7_spill] sm:$0xff] %v2948_v33 }
  0x8d   :  { %1356 = vperm.xlu0 %2345, %v1338_v24   ;;  %1361 = vperm.xlu1 %2346, %v1339_v25   ;;  %v2370_v24 = vld [vmem:[%s3464_s3 + $0x70] sm:$0xff]   ;;  %v2371_v25 = vld [vmem:[%s3464_s3 + $0x38] sm:$0xff]  }
  0x91   :  { %1366 = vperm.xlu0 %2345, %v1340_v26   ;;  %1371 = vperm.xlu1 %2346, %v1341_v27   ;;  %v2372_v26 = vld [vmem:[%s3464_s3 + $0x78] sm:$0xff]   ;;  %v2373_v27 = vld [vmem:[%s3464_s3 + $0x80] sm:$0xff]  }
  0x95   :  { %1376 = vperm.xlu0 %2345, %v1342_v28   ;;  %1381 = vperm.xlu1 %2346, %v1343_v29   ;;  %v2374_v28 = vld [vmem:[%s3464_s3 + $0x88] sm:$0xff]   ;;  %v2375_v29 = vld [vmem:[%s3464_s3 + $0x90] sm:$0xff]  }
  0x99   :  { %1822 = vperm.xlu0 %2345, %v1804_v30   ;;  %1827 = vperm.xlu1 %2346, %v1805_v31   ;;  %v2376_v30 = vld [vmem:[%s3464_s3 + $0x98] sm:$0xff]   ;;  %v2377_v31 = vld [vmem:[%s3464_s3 + $0xa0] sm:$0xff]  }
  0x9d   :  { %1832 = vperm.xlu0 %2345, %v1806_v34   ;;  %1386 = vperm.xlu1 %2346, %v1344_v35   ;;  %v2378_v34 = vld [vmem:[%s3464_s3 + $0xa8] sm:$0xff]   ;;  %v2379_v35 = vld [vmem:[%s3464_s3 + $0xb0] sm:$0xff]  }
  0xa1   :  { %1837 = vperm.xlu0 %2345, %v1807_v36   ;;  %1391 = vperm.xlu1 %2346, %v1345_v37   ;;  %v2956_v36 = vpop.permute.xlu0 %496  ;;  %v2959_v37 = vpop.permute.xlu1 %501 }
  0xa5   :  { %1842 = vperm.xlu0 %2345, %v1808_v38   ;;  %1396 = vperm.xlu1 %2346, %v1346_v39   ;;  %v2380_v38 = vld [vmem:[%s3464_s3 + $0xb8] sm:$0xff]   ;;  %v2965_v39 = vpop.permute.xlu0 %416 }
  0xa9   :  { %1847 = vperm.xlu0 %2345, %v1809_v40   ;;  %1401 = vperm.xlu1 %2346, %v1347_v41   ;;  %v2381_v40 = vld [vmem:[%s3464_s3 + $0xc0] sm:$0xff]   ;;  %v2970_v41 = vpop.permute.xlu1 %421 }
  0xad   :  { %1852 = vperm.xlu0 %2345, %v1810_v42   ;;  %1406 = vperm.xlu1 %2346, %v1348_v43   ;;  %v2974_v42 = vpop.permute.xlu0 %656  ;;  %v2382_v43 = vld [vmem:[%s3464_s3 + $0xc8] sm:$0xff]  }
  0xae   :  { %3473 = vst [vmem:[#allocation8_spill] sm:$0xff] %v2974_v42 }
  0xb1   :  { %1857 = vperm.xlu0 %2345, %v1811_v44   ;;  %1411 = vperm.xlu1 %2346, %v1349_v45   ;;  %v2979_v44 = vpop.permute.xlu1 %661  ;;  %v2383_v45 = vld [vmem:[%s3464_s3 + $0xd0] sm:$0xff]  }
  0xb2   :  { %3474 = vst [vmem:[#allocation9_spill] sm:$0xff] %v2979_v44 }
  0xb5   :  { %1862 = vperm.xlu0 %2345, %v1812_v46   ;;  %1416 = vperm.xlu1 %2346, %v1350_v47   ;;  %v2985_v46 = vpop.permute.xlu0 %576  ;;  %v2988_v47 = vpop.permute.xlu1 %581 }
  0xb6   :  { %3475 = vst [vmem:[#allocation10_spill] sm:$0xff] %v2985_v46  ;;  %3476 = vst [vmem:[#allocation11_spill] sm:$0xff] %v2988_v47 }
  0xb9   :  { %1867 = vperm.xlu0 %2345, %v1813_v48   ;;  %1421 = vperm.xlu1 %2346, %v1351_v49   ;;  %v2384_v48 = vld [vmem:[%s3464_s3 + $0xd8] sm:$0xff]   ;;  %v2385_v49 = vld [vmem:[%s3464_s3 + $0xe0] sm:$0xff]  }
  0xbd   :  { %1872 = vperm.xlu0 %2345, %v1814_v50   ;;  %1426 = vperm.xlu1 %2346, %v1352_v51   ;;  %v2996_v50 = vpop.permute.xlu0 %486  ;;  %v2999_v51 = vpop.permute.xlu1 %491 }
  0xc1   :  { %1877 = vperm.xlu0 %2345, %v1815_v52   ;;  %1431 = vperm.xlu1 %2346, %v1353_v53   ;;  %v2386_v52 = vld [vmem:[%s3464_s3 + $0xe8] sm:$0xff]   ;;  %v3005_v53 = vpop.permute.xlu0 %406 }
  0xc5   :  { %1882 = vperm.xlu0 %2345, %v1816_v54   ;;  %1887 = vperm.xlu1 %2346, %v1817_v55   ;;  %v2387_v54 = vld [vmem:[%s3464_s3 + $0xf0] sm:$0xff]   ;;  %v3010_v55 = vpop.permute.xlu1 %411 }
  0xc9   :  { %1892 = vperm.xlu0 %2345, %v1818_v56   ;;  %1897 = vperm.xlu1 %2346, %v1819_v57   ;;  %v3014_v56 = vpop.permute.xlu0 %646  ;;  %v2388_v57 = vld [vmem:[%s3464_s3 + $0xf8] sm:$0xff]  }
  0xca   :  { %3477 = vst [vmem:[#allocation12_spill] sm:$0xff] %v3014_v56 }
  0xcd   :  { %1940 = vperm.xlu0 %2345, %v1937_v60  }
 0x106   :  { %v2261_v62 = vpop.f32.mrf.mxu0 }
 0x107   :  { %v204_v0 = vadd.f32 %v2261_v62, %v73_v58  ;;  %v3019_v58 = vpop.permute.xlu1 %651 }
 0x108   :  { %v195_v63 = vpop.f32.mrf.mxu0  ;;  %3478 = vst [vmem:[#allocation13_spill] sm:$0xff] %v3019_v58 }
 0x109   :  { %v196_v2 = vadd.f32 %v195_v63, %v63_v59  ;;  %v212_v6 = vmax.f32 %v204_v0, 0.0  ;;  %v3022_v59 = vpop.permute.xlu0 %566 }
 0x10a   :  { %v2262_v1 = vpop.f32.mrf.mxu0  ;;  %3479 = vst [vmem:[#allocation14_spill] sm:$0xff] %v3022_v59 }
 0x10b   :  { %v207_v3 = vadd.f32 %v2262_v1, %v78_v61  ;;  %v210_v9 = vmax.f32 %v196_v2, 0.0  ;;  %v3024_v60 = vpop.permute.xlu1 %571 }
 0x10c   :  { %v198_v5 = vpop.f32.mrf.mxu0  ;;  %3480 = vst [vmem:[#allocation15_spill] sm:$0xff] %v3024_v60 }
 0x10d   :  { %v213_v7 = vmax.f32 %v207_v3, 0.0  ;;  %v199_v8 = vadd.f32 %v198_v5, %v68_v4  ;;  %v3026_v61 = vpop.permute.xlu0 %476 }
 0x10f   :  { %v279_v10 = vpack.c.bf16 %v213_v7, %v212_v6  ;;  %v211_v11 = vmax.f32 %v199_v8, 0.0  ;;  %v3028_v62 = vpop.permute.xlu1 %481 }
 0x111   :  { %v278_v12 = vpack.c.bf16 %v211_v11, %v210_v9  ;;  %2263 = vmatprep.subr.bf16.mxu0 %v279_v10  ;;  %2331 = vmatprep.subr.bf16.mxu1 %v279_v10  ;;  %v3030_v63 = vpop.permute.xlu0 %396  ;;  %v2391_v9 = vld [vmem:[%s3466_s5 + $0x4] ss:$16 sps:$4 sm:$0xff]  }
 0x112   :  { %2264 = vmatpush3.bf16.msra.mxu0 %v279_v10  ;;  %2333 = vmatpush3.bf16.msra.mxu1 %v279_v10 }
 0x113   :  { %2265 = vmatprep.subr.bf16.mxu0 %v278_v12  ;;  %2332 = vmatprep.subr.bf16.mxu1 %v278_v12  ;;  %v3032_v0 = vpop.permute.xlu1 %401 }
 0x115   :  { %v3034_v1 = vpop.permute.xlu0 %636 }
 0x116   :  { %2266 = vmatpush3.bf16.msra.mxu0 %v278_v12  ;;  %2334 = vmatpush3.bf16.msra.mxu1 %v278_v12  ;;  %3481 = vst [vmem:[#allocation16_spill] sm:$0xff] %v3034_v1 }
 0x117   :  { %v3036_v2 = vpop.permute.xlu1 %641 }
 0x118   :  { %3482 = vst [vmem:[#allocation17_spill] sm:$0xff] %v3036_v2 }
 0x119   :  { %2268 = vmatmul.mubr.msk.bf16.vlgmr.msra.gmra.mxu0 %vm824_vm1, %v2359_v13  ;;  %2284 = vmatmul.mubr.msk.bf16.vlgmr.msra.gmra.mxu1 %vm824_vm1, %v2360_v14  ;;  %v3038_v3 = vpop.permute.xlu0 %556 }
 0x11a   :  { %2271 = vmatprep.mubr.msk.bf16.mxu0 %vm824_vm1, %v2361_v15  ;;  %2287 = vmatprep.mubr.msk.bf16.mxu1 %vm824_vm1, %v2362_v16  ;;  %3483 = vst [vmem:[#allocation18_spill] sm:$0xff] %v3038_v3 }
 0x11b   :  { %v3040_v4 = vpop.permute.xlu1 %561 }
 0x11c   :  { %3484 = vst [vmem:[#allocation19_spill] sm:$0xff] %v3040_v4 }
 0x11d   :  { %v3042_v5 = vpop.permute.xlu0 %466 }
 0x11f   :  { %v3044_v6 = vpop.permute.xlu1 %471 }
 0x121   :  { %2272 = vmatmul.mubr.msk.bf16.gmra.mxu0 %vm824_vm1, %v2363_v17  ;;  %2288 = vmatmul.mubr.msk.bf16.gmra.mxu1 %vm824_vm1, %v2364_v18  ;;  %v3046_v7 = vpop.permute.xlu0 %386 }
 0x122   :  { %2275 = vmatprep.mubr.msk.bf16.mxu0 %vm824_vm1, %v2365_v19  ;;  %2291 = vmatprep.mubr.msk.bf16.mxu1 %vm824_vm1, %v2366_v20 }
 0x123   :  { %v3048_v8 = vpop.permute.xlu1 %391 }
 0x125   :  { %v3053_v10 = vpop.permute.xlu0 %626 }
 0x126   :  { %3485 = vst [vmem:[#allocation20_spill] sm:$0xff] %v3053_v10 }
 0x127   :  { %v3055_v11 = vpop.permute.xlu1 %631 }
 0x128   :  { %3486 = vst [vmem:[#allocation21_spill] sm:$0xff] %v3055_v11 }
 0x129   :  { %2276 = vmatmul.mubr.msk.bf16.gmra.mxu0 %vm824_vm1, %v2367_v21  ;;  %2292 = vmatmul.mubr.msk.bf16.gmra.mxu1 %vm824_vm1, %v2368_v22  ;;  %v3057_v12 = vpop.permute.xlu0 %546 }
 0x12a   :  { %2279 = vmatprep.mubr.msk.bf16.mxu0 %vm824_vm1, %v2369_v23  ;;  %2295 = vmatprep.mubr.msk.bf16.mxu1 %vm824_vm1, %v2370_v24  ;;  %3487 = vst [vmem:[#allocation22_spill] sm:$0xff] %v3057_v12 }
 0x12b   :  { %v3059_v13 = vpop.permute.xlu1 %551 }
 0x12c   :  { %3488 = vst [vmem:[#allocation23_spill] sm:$0xff] %v3059_v13 }
 0x12d   :  { %v3061_v14 = vpop.permute.xlu0 %456 }
 0x12f   :  { %v3063_v15 = vpop.permute.xlu1 %461 }
 0x131   :  { %2280 = vmatmul.mubr.msk.bf16.gmra.mxu0 %vm824_vm1, %v2371_v25  ;;  %2296 = vmatmul.mubr.msk.bf16.gmra.mxu1 %vm824_vm1, %v2372_v26  ;;  %v3065_v16 = vpop.permute.xlu0 %376 }
 0x132   :  { %2299 = vmatprep.mubr.msk.bf16.mxu1 %vm824_vm1, %v2373_v27  ;;  %1626 = vmatprep.mubr.bf16.mxu0 %v2391_v9 }
 0x133   :  { %v3067_v17 = vpop.permute.xlu1 %381 }
 0x135   :  { %v3069_v18 = vpop.permute.xlu0 %616 }
 0x136   :  { %3489 = vst [vmem:[#allocation24_spill] sm:$0xff] %v3069_v18 }
 0x137   :  { %v3071_v19 = vpop.permute.xlu1 %621 }
 0x138   :  { %3490 = vst [vmem:[#allocation25_spill] sm:$0xff] %v3071_v19 }
 0x139   :  { %2300 = vmatmul.mubr.msk.bf16.gmra.mxu1 %vm824_vm1, %v2374_v28  ;;  %v3073_v20 = vpop.permute.xlu0 %536 }
 0x13a   :  { %2303 = vmatprep.mubr.msk.bf16.mxu1 %vm824_vm1, %v2375_v29 }
 0x13b   :  { %v3075_v21 = vpop.permute.xlu1 %541 }
 0x13d   :  { %v3077_v22 = vpop.permute.xlu0 %446 }
 0x13f   :  { %v3079_v23 = vpop.permute.xlu1 %451 }
 0x141   :  { %2304 = vmatmul.mubr.msk.bf16.gmra.mxu1 %vm824_vm1, %v2376_v30  ;;  %v3081_v24 = vpop.permute.xlu0 %366 }
 0x142   :  { %2307 = vmatprep.mubr.msk.bf16.mxu1 %vm824_vm1, %v2377_v31  ;;  %3491 = vst [vmem:[#allocation26_spill] sm:$0xff] %v3081_v24 }
 0x143   :  { %v3083_v25 = vpop.permute.xlu1 %371 }
 0x145   :  { %v3085_v26 = vpop.permute.xlu0 %606 }
 0x146   :  { %3492 = vst [vmem:[#allocation27_spill] sm:$0xff] %v3085_v26 }
 0x147   :  { %v3087_v27 = vpop.permute.xlu1 %611 }
 0x148   :  { %3493 = vst [vmem:[#allocation28_spill] sm:$0xff] %v3087_v27 }
 0x149   :  { %2308 = vmatmul.mubr.msk.bf16.gmra.mxu1 %vm824_vm1, %v2378_v34  ;;  %v3089_v28 = vpop.permute.xlu0 %526 }
 0x14a   :  { %2311 = vmatprep.mubr.msk.bf16.mxu1 %vm824_vm1, %v2379_v35  ;;  %v2415_v35 = vld [vmem:[%s3466_s5 + $0xc] ss:$16 sps:$4 sm:$0xff]  }
 0x14b   :  { %v3091_v29 = vpop.permute.xlu1 %531 }
 0x14d   :  { %v3093_v30 = vpop.permute.xlu0 %436 }
 0x14e   :  { %3494 = vst [vmem:[#allocation29_spill] sm:$0xff] %v3093_v30 }
 0x151   :  { %2312 = vmatmul.mubr.msk.bf16.gmra.mxu1 %vm824_vm1, %v2380_v38  ;;  %v3102_v38 = vpop.permute.xlu1 %441 }
 0x152   :  { %2315 = vmatprep.mubr.msk.bf16.mxu1 %vm824_vm1, %v2381_v40 }
 0x159   :  { %2316 = vmatmul.mubr.msk.bf16.gmra.mxu1 %vm824_vm1, %v2382_v43 }
 0x15a   :  { %2319 = vmatprep.mubr.msk.bf16.mxu1 %vm824_vm1, %v2383_v45 }
 0x161   :  { %2320 = vmatmul.mubr.msk.bf16.gmra.mxu1 %vm824_vm1, %v2384_v48 }
 0x162   :  { %2323 = vmatprep.mubr.msk.bf16.mxu1 %vm824_vm1, %v2385_v49  ;;  %v3112_v49 = vpop.permute.xlu0 %356 }
 0x163   :  { %3500 = vst [vmem:[#allocation35_spill] sm:$0xff] %v3112_v49 }
 0x169   :  { %2324 = vmatmul.mubr.msk.bf16.gmra.mxu1 %vm824_vm1, %v2386_v52 }
 0x16a   :  { %2327 = vmatprep.mubr.msk.bf16.mxu1 %vm824_vm1, %v2387_v54 }
 0x171   :  { %2328 = vmatmul.mubr.msk.bf16.gmra.mxu1 %vm824_vm1, %v2388_v57  ;;  %v3118_v57 = vpop.permute.xlu1 %361 }
 0x172   :  { %1723 = vmatprep.mubr.bf16.mxu1 %v2415_v35  ;;  %3503 = vst [vmem:[#allocation38_spill] sm:$0xff] %v3118_v57  ;;  %v3128_v35 = vpop.permute.xlu0 %596 }
 0x173   :  { %3505 = vst [vmem:[#allocation40_spill] sm:$0xff] %v3128_v35 }
 0x175   :  { %v3132_v13 = vpop.permute.xlu1 %601 }
 0x176   :  { %3506 = vst [vmem:[#allocation41_spill] sm:$0xff] %v3132_v13  ;;  %v517_v1 = vpop.permute.xlu0 %516 }
 0x179   :  { %v522_v2 = vpop.permute.xlu1 %521 }
 0x17a   :  { %v3140_v46 = vpop.permute.xlu0 %426 }
 0x17b   :  { %3507 = vst [vmem:[#allocation42_spill] sm:$0xff] %v3140_v46 }
 0x17d   :  { %v3142_v13 = vpop.permute.xlu1 %431 }
 0x17e   :  { %3508 = vst [vmem:[#allocation43_spill] sm:$0xff] %v3142_v13  ;;  %v3146_v49 = vpop.permute.xlu0 %586 }
 0x181   :  { %v3154_v30 = vpop.permute.xlu1 %591 }
 0x1d9   :  { %v3095_v31 = vpop.f32.mrf.mxu0  ;;  %v3097_v34 = vpop.f32.mrf.mxu1 }
 0x1da   :  { %3495 = vst [vmem:[#allocation30_spill] sm:$0xff] %v3095_v31  ;;  %3496 = vst [vmem:[#allocation31_spill] sm:$0xff] %v3097_v34 }
 0x1db   :  { %v3104_v40 = vpop.f32.mrf.mxu0  ;;  %v3106_v43 = vpop.f32.mrf.mxu1 }
 0x1dc   :  { %3497 = vst [vmem:[#allocation32_spill] sm:$0xff] %v3104_v40  ;;  %3498 = vst [vmem:[#allocation33_spill] sm:$0xff] %v3106_v43 }
 0x1dd   :  { %v3108_v45 = vpop.f32.mrf.mxu0  ;;  %v3110_v48 = vpop.f32.mrf.mxu1 }
 0x1de   :  { %3499 = vst [vmem:[#allocation34_spill] sm:$0xff] %v3108_v45 }
 0x1df   :  { %v3114_v52 = vpop.f32.mrf.mxu0  ;;  %v3116_v54 = vpop.f32.mrf.mxu1 }
 0x1e0   :  { %3501 = vst [vmem:[#allocation36_spill] sm:$0xff] %v3114_v52  ;;  %3502 = vst [vmem:[#allocation37_spill] sm:$0xff] %v3116_v54 }
 0x1e1   :  { %v3120_v9 = vpop.f32.mrf.mxu0  ;;  %v3122_v26 = vpop.f32.mrf.mxu1 }
 0x1e3   :  { %v3124_v27 = vpop.f32.mrf.mxu0  ;;  %v3126_v18 = vpop.f32.mrf.mxu1 }
 0x1e4   :  { %3504 = vst [vmem:[#allocation39_spill] sm:$0xff] %v3124_v27 }
 0x1e5   :  { %v3130_v12 = vpop.f32.mrf.mxu0  ;;  %v2290_v19 = vpop.f32.mrf.mxu1 }
 0x1e7   :  { %v3134_v10 = vpop.f32.mrf.mxu0  ;;  %v3136_v3 = vpop.f32.mrf.mxu1 }
 0x1e9   :  { %v2277_v11 = vpop.f32.mrf.mxu0  ;;  %v2293_v4 = vpop.f32.mrf.mxu1 }
 0x1eb   :  { %v3138_v59 = vpop.f32.mrf.mxu0  ;;  %v1051_v58 = vpop.f32.mrf.mxu1 }
 0x1ed   :  { %v2278_v60 = vpop.f32.mrf.mxu0  ;;  %v2294_v44 = vpop.f32.mrf.mxu1 }
 0x1ee   :  { %v1063_v57 = vadd.f32 %v2294_v44, %v3028_v62 }
 0x1ef   :  { %v990_v56 = vpop.f32.mrf.mxu0  ;;  %v1054_v35 = vpop.f32.mrf.mxu1 }
 0x1f1   :  { %v2281_v42 = vpop.f32.mrf.mxu0  ;;  %v2297_v47 = vpop.f32.mrf.mxu1 }
 0x1f2   :  { %v1012_v40 = vadd.f32 %v2281_v42, %v2965_v39  ;;  %v1076_v32 = vadd.f32 %v2297_v47, %v2956_v36 }
 0x1f3   :  { %v1003_v52 = vpop.f32.mrf.mxu0  ;;  %v1067_v33 = vpop.f32.mrf.mxu1 }
 0x1f4   :  { %v1068_v54 = vadd.f32 %v1067_v33, %v2996_v50  ;;  %v1224_v27 = vmax.f32 %v1012_v40, 0.0  ;;  %v1240_v13 = vmax.f32 %v1076_v32, 0.0  ;;  %v1060_v33 = vadd.f32 %v2293_v4, %v3026_v61 }
 0x1f5   :  { %v2282_v43 = vpop.f32.mrf.mxu0  ;;  %v2298_v31 = vpop.f32.mrf.mxu1  ;;  %v999_v32 = vadd.f32 %v2278_v60, %v3032_v0  ;;  %v1237_v40 = vmax.f32 %v1063_v57, 0.0  ;;  %v996_v61 = vadd.f32 %v2277_v11, %v3030_v63 }
 0x1f6   :  { %v1015_v45 = vadd.f32 %v2282_v43, %v2970_v41  ;;  %v1079_v46 = vadd.f32 %v2298_v31, %v2959_v37  ;;  %v1004_v41 = vadd.f32 %v1003_v52, %v3005_v53  ;;  %v1238_v37 = vmax.f32 %v1068_v54, 0.0 }
 0x1f7   :  { %v1006_v24 = vpop.f32.mrf.mxu0  ;;  %v1070_v39 = vpop.f32.mrf.mxu1  ;;  %v1236_v4 = vmax.f32 %v1060_v33, 0.0 }
 0x1f8   :  { %v1225_v42 = vmax.f32 %v1015_v45, 0.0  ;;  %v1241_v36 = vmax.f32 %v1079_v46, 0.0  ;;  %v1007_v47 = vadd.f32 %v1006_v24, %v3010_v55  ;;  %v1071_v34 = vadd.f32 %v1070_v39, %v2999_v51  ;;  %v507_v24 = vpop.permute.xlu0 %506 }
 0x1f9   :  { %v2301_v50 = vpop.f32.mrf.mxu1  ;;  %v1055_v55 = vadd.f32 %v1054_v35, %v3044_v6  ;;  %v1222_v53 = vmax.f32 %v1004_v41, 0.0  ;;  %v1319_v54 = vpack.c.bf16 %v1237_v40, %v1236_v4  ;;  %v991_v6 = vadd.f32 %v990_v56, %v3048_v8 }
 0x1fa   :  { %v1313_v31 = vpack.c.bf16 %v1225_v42, %v1224_v27  ;;  %v1321_v44 = vpack.c.bf16 %v1241_v36, %v1240_v13  ;;  %v1239_v62 = vmax.f32 %v1071_v34, 0.0  ;;  %v1223_v43 = vmax.f32 %v1007_v47, 0.0 }
 0x1fb   :  { %v1092_v46 = vadd.f32 %v2301_v50, %v517_v1  ;;  %v1083_v45 = vpop.f32.mrf.mxu1  ;;  %v1047_v13 = vadd.f32 %v2290_v19, %v3063_v15  ;;  %v1052_v27 = vadd.f32 %v1051_v58, %v3042_v5  ;;  %v512_v1 = vpop.permute.xlu1 %511  ;;  %v1221_v34 = vmax.f32 %v999_v32, 0.0 }
 0x1fc   :  { %v1320_v51 = vpack.c.bf16 %v1239_v62, %v1238_v37  ;;  %2115 = vmatprep.subr.bf16.mxu0 %v1321_v44  ;;  %v1084_v60 = vadd.f32 %v1083_v45, %v507_v24  ;;  %v1312_v57 = vpack.c.bf16 %v1223_v43, %v1222_v53  ;;  %v1235_v39 = vmax.f32 %v1055_v55, 0.0  ;;  %v3512_v24 = vld [vmem:[#allocation39_spill] sm:$0xff] }
 0x1fd   :  { %v2302_v52 = vpop.f32.mrf.mxu1  ;;  %2116 = vmatpush3.bf16.msra.mxu0 %v1313_v31  ;;  %v1244_v63 = vmax.f32 %v1092_v46, 0.0  ;;  %v1044_v36 = vadd.f32 %v3122_v26, %v3061_v14  ;;  %v1220_v15 = vmax.f32 %v996_v61, 0.0  ;;  %v988_v58 = vadd.f32 %v3138_v59, %v3046_v7 }
 0x1fe   :  { %v1095_v0 = vadd.f32 %v2302_v52, %v522_v2  ;;  %2117 = vmatprep.subr.bf16.mxu0 %v1320_v51  ;;  %v1234_v5 = vmax.f32 %v1052_v27, 0.0  ;;  %v1242_v19 = vmax.f32 %v1084_v60, 0.0  ;;  %v983_v8 = vadd.f32 %v3130_v12, %v3067_v17  ;;  %v3510_v51 = vld [vmem:[#allocation31_spill] sm:$0xff]  ;;  %v3513_v52 = vld [vmem:[#allocation38_spill] sm:$0xff] }
 0x1ff   :  { %v1086_v35 = vpop.f32.mrf.mxu1  ;;  %v1233_v33 = vmax.f32 %v1047_v13, 0.0  ;;  %v1311_v41 = vpack.c.bf16 %v1221_v34, %v1220_v15  ;;  %v1219_v50 = vmax.f32 %v991_v6, 0.0  ;;  %v1039_v14 = vadd.f32 %v3136_v3, %v3079_v23  ;;  %v3514_v13 = vld [vmem:[#allocation34_spill] sm:$0xff]  ;;  %v3515_v34 = vld [vmem:[#allocation43_spill] sm:$0xff] }
 0x200   :  { %v1245_v11 = vmax.f32 %v1095_v0, 0.0  ;;  %v1087_v42 = vadd.f32 %v1086_v35, %v512_v1  ;;  %v1318_v26 = vpack.c.bf16 %v1235_v39, %v1234_v5  ;;  %v980_v31 = vadd.f32 %v3120_v9, %v3065_v16  ;;  %v3517_v39 = vld [vmem:[#allocation35_spill] sm:$0xff] }
 0x201   :  { %v2305_v2 = vpop.f32.mrf.mxu1  ;;  %2118 = vmatpush3.bf16.msra.mxu0 %v1312_v57  ;;  %v1232_v44 = vmax.f32 %v1044_v36, 0.0  ;;  %v1218_v62 = vmax.f32 %v988_v58, 0.0  ;;  %v1031_v12 = vadd.f32 %v3110_v48, %v3102_v38  ;;  %v1036_v17 = vadd.f32 %v3126_v18, %v3077_v22  ;;  %v3509_v48 = vld [vmem:[#allocation29_spill] sm:$0xff]  ;;  %v3519_v58 = vld [vmem:[#allocation42_spill] sm:$0xff] }
 0x202   :  { %v3168_v47 = vpack.c.bf16 %v1245_v11, %v1244_v63  ;;  %v1243_v56 = vmax.f32 %v1087_v42, 0.0  ;;  %2119 = vmatprep.subr.bf16.mxu0 %v1319_v54  ;;  %v1108_v7 = vadd.f32 %v2305_v2, %v3073_v20  ;;  %v1217_v40 = vmax.f32 %v983_v8, 0.0  ;;  %v3516_v54 = vld [vmem:[#allocation37_spill] sm:$0xff]  ;;  %v3518_v63 = vld [vmem:[#allocation30_spill] sm:$0xff]  ;;  %v3522_v8 = vld [vmem:[#allocation36_spill] sm:$0xff] }
 0x203   :  { %v1099_v37 = vpop.f32.mrf.mxu1  ;;  %v1317_v20 = vpack.c.bf16 %v1233_v33, %v1232_v44  ;;  %v975_v16 = vadd.f32 %v3134_v10, %v3083_v25  ;;  %v1310_v9 = vpack.c.bf16 %v1219_v50, %v1218_v62  ;;  %v1231_v46 = vmax.f32 %v1039_v14, 0.0  ;;  %v3520_v2 = vld [vmem:[#allocation33_spill] sm:$0xff] }
 0x204   :  { %v3174_v59 = vpack.c.bf16 %v1243_v56, %v1242_v19  ;;  %v1100_v3 = vadd.f32 %v1099_v37, %v3089_v28  ;;  %v1248_v45 = vmax.f32 %v1108_v7, 0.0  ;;  %v1028_v18 = vadd.f32 %v3510_v51, %v3509_v48  ;;  %v3511_v28 = vld [vmem:[#allocation26_spill] sm:$0xff]  ;;  %v3521_v56 = vld [vmem:[#allocation7_spill] sm:$0xff] }
 0x205   :  { %v2306_v32 = vpop.f32.mrf.mxu1  ;;  %2120 = vmatpush3.bf16.msra.mxu0 %v1311_v41  ;;  %v1216_v22 = vmax.f32 %v980_v31, 0.0  ;;  %v1230_v4 = vmax.f32 %v1036_v17, 0.0  ;;  %v967_v27 = vadd.f32 %v3514_v13, %v3513_v52  ;;  %v1215_v60 = vmax.f32 %v975_v16, 0.0  ;;  %v3523_v7 = vld [vmem:[#allocation6_spill] sm:$0xff]  ;;  %v3524_v31 = vld [vmem:[#allocation32_spill] sm:$0xff] }
 0x206   :  { %v1111_v23 = vadd.f32 %v2306_v32, %v3075_v21  ;;  %2121 = vmatprep.subr.bf16.mxu0 %v1318_v26  ;;  %v972_v21 = vadd.f32 %v3512_v24, %v3511_v28  ;;  %v1246_v53 = vmax.f32 %v1100_v3, 0.0  ;;  %v1229_v1 = vmax.f32 %v1031_v12, 0.0  ;;  %v2394_v51 = vld [vmem:[%s3466_s5 + $0x20] ss:$16 sps:$4 sm:$0xff]  }
 0x207   :  { %v1102_v43 = vpop.f32.mrf.mxu1  ;;  %v1023_v6 = vadd.f32 %v3516_v54, %v3515_v34  ;;  %v1316_v57 = vpack.c.bf16 %v1231_v46, %v1230_v4  ;;  %v964_v11 = vadd.f32 %v3518_v63, %v3517_v39  ;;  %v1228_v15 = vmax.f32 %v1028_v18, 0.0  ;;  %v2397_v4 = vld [vmem:[%s3466_s5 + $0x40] ss:$16 sps:$4 sm:$0xff]  }
 0x208   :  { %v1249_v55 = vmax.f32 %v1111_v23, 0.0  ;;  %v1103_v38 = vadd.f32 %v1102_v43, %v3091_v29  ;;  %v1309_v29 = vpack.c.bf16 %v1217_v40, %v1216_v22  ;;  %v1214_v42 = vmax.f32 %v972_v21, 0.0  ;;  %v2389_v43 = vld [vmem:[%s3466_s5] ss:$16 sps:$4 sm:$0xff]   ;;  %v2395_v22 = vld [vmem:[%s3466_s5 + $0x44] ss:$16 sps:$4 sm:$0xff]  }
 0x209   :  { %v3192_v61 = vpop.f32.mrf.mxu1  ;;  %2122 = vmatpush3.bf16.msra.mxu0 %v1310_v9  ;;  %v1020_v5 = vadd.f32 %v3520_v2, %v3519_v58  ;;  %v1213_v19 = vmax.f32 %v967_v27, 0.0  ;;  %v959_v33 = vadd.f32 %v3522_v8, %v3521_v56  ;;  %v1315_v37 = vpack.c.bf16 %v1229_v1, %v1228_v15  ;;  %v2401_v1 = vld [vmem:[%s3466_s5 + $0x84] ss:$16 sps:$4 sm:$0xff]   ;;  %v3525_v34 = vld [vmem:[#allocation11_spill] sm:$0xff]  ;;  %v3529_v2 = vld [vmem:[#allocation9_spill] sm:$0xff] }
 0x20a   :  { %v3194_v10 = vpack.c.bf16 %v1249_v55, %v1248_v45  ;;  %v1247_v25 = vmax.f32 %v1103_v38, 0.0  ;;  %2123 = vmatprep.subr.bf16.mxu0 %v1317_v20  ;;  %v1308_v41 = vpack.c.bf16 %v1215_v60, %v1214_v42  ;;  %v1227_v14 = vmax.f32 %v1023_v6, 0.0  ;;  %v2392_v45 = vld [vmem:[%s3466_s5 + $0x24] ss:$16 sps:$4 sm:$0xff]   ;;  %v3530_v56 = vld [vmem:[#allocation15_spill] sm:$0xff] }
 0x20b   :  { %v3198_v0 = vpop.f32.mrf.mxu1  ;;  %v1212_v26 = vmax.f32 %v964_v11, 0.0  ;;  %v956_v44 = vadd.f32 %v3524_v31, %v3523_v7  ;;  %v1226_v32 = vmax.f32 %v1020_v5, 0.0  ;;  %v1211_v17 = vmax.f32 %v959_v33, 0.0  ;;  %v3527_v63 = vld [vmem:[#allocation10_spill] sm:$0xff]  ;;  %v3528_v15 = vld [vmem:[#allocation12_spill] sm:$0xff]  ;;  %v3532_v7 = vld [vmem:[#allocation13_spill] sm:$0xff] }
 0x20c   :  { %v3202_v35 = vpack.c.bf16 %v1247_v25, %v1246_v53  ;;  %v2398_v25 = vld [vmem:[%s3466_s5 + $0x64] ss:$16 sps:$4 sm:$0xff]  }
 0x20d   :  { %v3206_v36 = vpop.f32.mrf.mxu1  ;;  %2124 = vmatpush3.bf16.msra.mxu0 %v1309_v29  ;;  %v1307_v12 = vpack.c.bf16 %v1213_v19, %v1212_v26  ;;  %v1314_v23 = vpack.c.bf16 %v1227_v14, %v1226_v32  ;;  %v1210_v40 = vmax.f32 %v956_v44, 0.0  ;;  %v2400_v29 = vld [vmem:[%s3466_s5 + $0x60] ss:$16 sps:$4 sm:$0xff]  }
 0x20e   :  { %2125 = vmatprep.subr.bf16.mxu0 %v1316_v57  ;;  %v3526_v57 = vld [vmem:[#allocation8_spill] sm:$0xff]  ;;  %v3533_v32 = vld [vmem:[#allocation14_spill] sm:$0xff] }
 0x20f   :  { %v3212_v50 = vpop.f32.mrf.mxu1  ;;  %v1306_v16 = vpack.c.bf16 %v1211_v17, %v1210_v40  ;;  %v2403_v44 = vld [vmem:[%s3466_s5 + $0x80] ss:$16 sps:$4 sm:$0xff]   ;;  %v2404_v17 = vld [vmem:[%s3466_s5 + $0xa4] ss:$16 sps:$4 sm:$0xff]  }
 0x211   :  { %v2313_v62 = vpop.f32.mrf.mxu1  ;;  %2126 = vmatpush3.bf16.msra.mxu0 %v1308_v41  ;;  %v3531_v41 = vld [vmem:[#allocation17_spill] sm:$0xff] }
 0x212   :  { %2127 = vmatprep.subr.bf16.mxu0 %v1315_v37  ;;  %v1140_v11 = vadd.f32 %v2313_v62, %v3527_v63  ;;  %v3540_v63 = vld [vmem:[#allocation25_spill] sm:$0xff] }
 0x213   :  { %v1131_v3 = vpop.f32.mrf.mxu1 }
 0x214   :  { %v1256_v62 = vmax.f32 %v1140_v11, 0.0 }
 0x215   :  { %v2314_v20 = vpop.f32.mrf.mxu1  ;;  %2128 = vmatpush3.bf16.msra.mxu0 %v1307_v12  ;;  %v1132_v12 = vadd.f32 %v1131_v3, %v3533_v32  ;;  %v3537_v3 = vld [vmem:[#allocation18_spill] sm:$0xff] }
 0x216   :  { %2129 = vmatprep.subr.bf16.mxu0 %v1314_v23  ;;  %v1143_v54 = vadd.f32 %v2314_v20, %v3525_v34  ;;  %v3534_v23 = vld [vmem:[#allocation16_spill] sm:$0xff] }
 0x217   :  { %v1134_v9 = vpop.f32.mrf.mxu1  ;;  %v3538_v34 = vld [vmem:[#allocation20_spill] sm:$0xff] }
 0x218   :  { %v1257_v19 = vmax.f32 %v1143_v54, 0.0  ;;  %v1135_v8 = vadd.f32 %v1134_v9, %v3530_v56 }
 0x219   :  { %v3219_v46 = vpop.f32.mrf.mxu1  ;;  %2130 = vmatpush3.bf16.msra.mxu0 %v1306_v16 }
 0x21b   :  { %v3224_v55 = vpop.f32.mrf.mxu1 }
 0x21c   :  { %1627 = vmatmul.mubr.bf16.vlgmr.msra.gmra.mxu0 %v2389_v43  ;;  %v3535_v43 = vld [vmem:[#allocation19_spill] sm:$0xff] }
 0x21d   :  { %v3226_v38 = vpop.f32.mrf.mxu1  ;;  %1634 = vmatprep.mubr.bf16.mxu0 %v2392_v45  ;;  %v1127_v45 = vadd.f32 %v3206_v36, %v3535_v43  ;;  %v3539_v36 = vld [vmem:[#allocation23_spill] sm:$0xff] }
 0x21f   :  { %v3228_v48 = vpop.f32.mrf.mxu1 }
 0x221   :  { %v3233_v18 = vpop.f32.mrf.mxu1 }
 0x223   :  { %v3238_v28 = vpop.f32.mrf.mxu1 }
 0x224   :  { %1635 = vmatmul.mubr.bf16.gmra.mxu0 %v2394_v51  ;;  %v1329_v51 = vpack.c.bf16 %v1257_v19, %v1256_v62 }
 0x225   :  { %v2322_v24 = vpop.f32.mrf.mxu1  ;;  %1642 = vmatprep.mubr.bf16.mxu0 %v2395_v22  ;;  %v1255_v22 = vmax.f32 %v1135_v8, 0.0 }
 0x227   :  { %v3240_v21 = vpop.f32.mrf.mxu1 }
 0x229   :  { %v2325_v53 = vpop.f32.mrf.mxu1 }
 0x22a   :  { %v1188_v40 = vadd.f32 %v2325_v53, %v3534_v23 }
 0x22b   :  { %v1179_v52 = vpop.f32.mrf.mxu1 }
 0x22c   :  { %1643 = vmatmul.mubr.bf16.gmra.mxu0 %v2397_v4  ;;  %v1268_v53 = vmax.f32 %v1188_v40, 0.0  ;;  %v1180_v54 = vadd.f32 %v1179_v52, %v3538_v34  ;;  %v2407_v52 = vld [vmem:[%s3466_s5 + $0xc4] ss:$16 sps:$4 sm:$0xff]  }
 0x22d   :  { %v2326_v13 = vpop.f32.mrf.mxu1  ;;  %1650 = vmatprep.mubr.bf16.mxu0 %v2398_v25  ;;  %v3536_v25 = vld [vmem:[#allocation21_spill] sm:$0xff] }
 0x22e   :  { %v1191_v37 = vadd.f32 %v2326_v13, %v3531_v41  ;;  %v1266_v19 = vmax.f32 %v1180_v54, 0.0 }
 0x22f   :  { %v1182_v27 = vpop.f32.mrf.mxu1 }
 0x230   :  { %v1269_v4 = vmax.f32 %v1191_v37, 0.0  ;;  %v1183_v13 = vadd.f32 %v1182_v27, %v3536_v25  ;;  %v1175_v27 = vadd.f32 %v2322_v24, %v3540_v63  ;;  %v2428_v25 = vld [vmem:[%s3466_s5 + $0xac] ss:$16 sps:$4 sm:$0xff]  }
 0x231   :  { %v2329_v60 = vpop.f32.mrf.mxu1 }
 0x232   :  { %v1204_v39 = vadd.f32 %v2329_v60, %v3526_v57  ;;  %v1124_v60 = vadd.f32 %v3192_v61, %v3537_v3  ;;  %v1119_v57 = vadd.f32 %v3212_v50, %v3539_v36  ;;  %v1335_v11 = vpack.c.bf16 %v1269_v4, %v1268_v53  ;;  %v2406_v61 = vld [vmem:[%s3466_s5 + $0xa0] ss:$16 sps:$4 sm:$0xff]   ;;  %v2427_v4 = vld [vmem:[%s3466_s5 + $0x88] ss:$16 sps:$4 sm:$0xff]  }
 0x233   :  { %v1195_v6 = vpop.f32.mrf.mxu1  ;;  %v1265_v8 = vmax.f32 %v1175_v27, 0.0  ;;  %v2433_v3 = vld [vmem:[%s3466_s5 + $0xc8] ss:$16 sps:$4 sm:$0xff]  }
 0x234   :  { %1651 = vmatmul.mubr.bf16.gmra.mxu0 %v2400_v29  ;;  %v1196_v58 = vadd.f32 %v1195_v6, %v3528_v15  ;;  %v1272_v14 = vmax.f32 %v1204_v39, 0.0  ;;  %v1253_v6 = vmax.f32 %v1127_v45, 0.0  ;;  %v1252_v15 = vmax.f32 %v1124_v60, 0.0  ;;  %v2434_v60 = vld [vmem:[%s3466_s5 + $0xec] ss:$16 sps:$4 sm:$0xff]  }
 0x235   :  { %v2330_v42 = vpop.f32.mrf.mxu1  ;;  %1658 = vmatprep.mubr.bf16.mxu0 %v2401_v1  ;;  %v1254_v1 = vmax.f32 %v1132_v12, 0.0  ;;  %v1251_v56 = vmax.f32 %v1119_v57, 0.0  ;;  %v2410_v12 = vld [vmem:[%s3466_s5 + $0xe4] ss:$16 sps:$4 sm:$0xff]  }
 0x236   :  { %v1207_v5 = vadd.f32 %v2330_v42, %v3529_v2  ;;  %v1270_v20 = vmax.f32 %v1196_v58, 0.0  ;;  %v1267_v42 = vmax.f32 %v1183_v13, 0.0  ;;  %v3541_v58 = vld [vmem:[#allocation22_spill] sm:$0xff]  ;;  %v1327_v24 = vpack.c.bf16 %v1253_v6, %v1252_v15 }
 0x237   :  { %v1198_v33 = vpop.f32.mrf.mxu1  ;;  %v1328_v39 = vpack.c.bf16 %v1255_v22, %v1254_v1  ;;  %v1116_v2 = vadd.f32 %v3198_v0, %v3541_v58  ;;  %v2425_v22 = vld [vmem:[%s3466_s5 + $0x8c] ss:$16 sps:$4 sm:$0xff]   ;;  %v2430_v13 = vld [vmem:[%s3466_s5 + $0xa8] ss:$16 sps:$4 sm:$0xff]   ;;  %v1362_v58 = vpop.permute.xlu1 %1361 }
 0x238   :  { %v1273_v26 = vmax.f32 %v1207_v5, 0.0  ;;  %v1199_v31 = vadd.f32 %v1198_v33, %v3532_v7  ;;  %v3542_v5 = vld [vmem:[#allocation24_spill] sm:$0xff]  ;;  %v1334_v37 = vpack.c.bf16 %v1267_v42, %v1266_v19 }
 0x239   :  { %v1172_v50 = vadd.f32 %v3233_v18, %v3542_v5  ;;  %v3543_v33 = vld [vmem:[#allocation28_spill] sm:$0xff]  ;;  %v3545_v18 = vld [vmem:[#allocation41_spill] sm:$0xff] }
 0x23a   :  { %v1337_v16 = vpack.c.bf16 %v1273_v26, %v1272_v14  ;;  %v1271_v9 = vmax.f32 %v1199_v31, 0.0  ;;  %v1167_v41 = vadd.f32 %v3240_v21, %v3543_v33  ;;  %v1250_v14 = vmax.f32 %v1116_v2, 0.0  ;;  %v3544_v26 = vld [vmem:[#allocation27_spill] sm:$0xff] }
 0x23b   :  { %v1264_v0 = vmax.f32 %v1172_v50, 0.0  ;;  %v1164_v7 = vadd.f32 %v3238_v28, %v3544_v26  ;;  %v2409_v21 = vld [vmem:[%s3466_s5 + $0xc0] ss:$16 sps:$4 sm:$0xff]   ;;  %v2436_v1 = vld [vmem:[%s3466_s5 + $0xe8] ss:$16 sps:$4 sm:$0xff]   ;;  %v1372_v50 = vpop.permute.xlu1 %1371 }
 0x23c   :  { %v1336_v29 = vpack.c.bf16 %v1271_v9, %v1270_v20  ;;  %1659 = vmatmul.mubr.bf16.gmra.mxu0 %v2403_v44  ;;  %2179 = vmatprep.subr.bf16.mxu1 %v1337_v16  ;;  %v1326_v31 = vpack.c.bf16 %v1251_v56, %v1250_v14  ;;  %v1159_v44 = vadd.f32 %v3226_v38, %v3545_v18  ;;  %v1263_v32 = vmax.f32 %v1167_v41, 0.0 }
 0x23d   :  { %2180 = vmatpush3.bf16.msra.mxu1 %v1329_v51  ;;  %1666 = vmatprep.mubr.bf16.mxu0 %v2404_v17  ;;  %v1333_v62 = vpack.c.bf16 %v1265_v8, %v1264_v0  ;;  %v3546_v17 = vld [vmem:[#allocation40_spill] sm:$0xff]  ;;  %v1262_v28 = vmax.f32 %v1164_v7, 0.0  ;;  %v1151_v38 = vadd.f32 %v3228_v48, %v3154_v30  ;;  %v1148_v9 = vadd.f32 %v3224_v55, %v3146_v49  ;;  %v2422_v55 = vld [vmem:[%s3466_s5 + $0x6c] ss:$16 sps:$4 sm:$0xff]  }
 0x23e   :  { %2181 = vmatprep.subr.bf16.mxu1 %v1336_v29  ;;  %v1156_v23 = vadd.f32 %v3219_v46, %v3546_v17  ;;  %v1261_v40 = vmax.f32 %v1159_v44, 0.0  ;;  %v2412_v46 = vld [vmem:[%s3466_s5 + $0xe0] ss:$16 sps:$4 sm:$0xff]   ;;  %v2413_v49 = vld [vmem:[%s3466_s5 + $0x8] ss:$16 sps:$4 sm:$0xff]  }
 0x23f   :  { %v1332_v20 = vpack.c.bf16 %v1263_v32, %v1262_v28  ;;  %v1259_v45 = vmax.f32 %v1151_v38, 0.0  ;;  %v1258_v51 = vmax.f32 %v1148_v9, 0.0  ;;  %v2424_v48 = vld [vmem:[%s3466_s5 + $0x68] ss:$16 sps:$4 sm:$0xff]   ;;  %v2431_v29 = vld [vmem:[%s3466_s5 + $0xcc] ss:$16 sps:$4 sm:$0xff]   ;;  %v3371_v56 = vpop.permute.xlu1 %1381 }
 0x240   :  { %v1260_v16 = vmax.f32 %v1156_v23, 0.0 }
 0x241   :  { %2182 = vmatpush3.bf16.msra.mxu1 %v1328_v39  ;;  %v1330_v30 = vpack.c.bf16 %v1259_v45, %v1258_v51 }
 0x242   :  { %2183 = vmatprep.subr.bf16.mxu1 %v1335_v11  ;;  %v1331_v43 = vpack.c.bf16 %v1261_v40, %v1260_v16 }
 0x244   :  { %1667 = vmatmul.mubr.bf16.gmra.mxu0 %v2406_v61  ;;  %v1357_v61 = vpop.permute.xlu0 %1356 }
 0x245   :  { %2184 = vmatpush3.bf16.msra.mxu1 %v1327_v24  ;;  %1674 = vmatprep.mubr.bf16.mxu0 %v2407_v52 }
 0x246   :  { %2185 = vmatprep.subr.bf16.mxu1 %v1334_v37  ;;  %v3379_v37 = vpop.permute.xlu1 %1827 }
 0x248   :  { %v1367_v52 = vpop.permute.xlu0 %1366 }
 0x249   :  { %2186 = vmatpush3.bf16.msra.mxu1 %v1326_v31 }
 0x24a   :  { %2187 = vmatprep.subr.bf16.mxu1 %v1333_v62  ;;  %v3385_v7 = vpop.permute.xlu1 %1386 }
 0x24c   :  { %1675 = vmatmul.mubr.bf16.gmra.mxu0 %v2409_v21  ;;  %v3367_v19 = vpop.permute.xlu0 %1376 }
 0x24d   :  { %2188 = vmatpush3.bf16.msra.mxu1 %v3194_v10  ;;  %1682 = vmatprep.mubr.bf16.mxu0 %v2410_v12  ;;  %v2416_v10 = vld [vmem:[%s3466_s5 + $0x2c] ss:$16 sps:$4 sm:$0xff]  }
 0x24e   :  { %2189 = vmatprep.subr.bf16.mxu1 %v1332_v20  ;;  %v3393_v12 = vpop.permute.xlu1 %1391 }
 0x250   :  { %v3375_v33 = vpop.permute.xlu0 %1822 }
 0x251   :  { %2190 = vmatpush3.bf16.msra.mxu1 %v3202_v35  ;;  %v2418_v35 = vld [vmem:[%s3466_s5 + $0x28] ss:$16 sps:$4 sm:$0xff]  }
 0x252   :  { %2191 = vmatprep.subr.bf16.mxu1 %v1331_v43  ;;  %v3399_v20 = vpop.permute.xlu1 %1396 }
 0x254   :  { %1683 = vmatmul.mubr.bf16.gmra.mxu0 %v2412_v46  ;;  %v3381_v14 = vpop.permute.xlu0 %1832 }
 0x255   :  { %2192 = vmatpush3.bf16.msra.mxu1 %v3168_v47  ;;  %v2419_v47 = vld [vmem:[%s3466_s5 + $0x4c] ss:$16 sps:$4 sm:$0xff]  }
 0x256   :  { %2193 = vmatprep.subr.bf16.mxu1 %v1330_v30  ;;  %v3407_v30 = vpop.permute.xlu1 %1401 }
 0x257   :  { %3550 = vst [vmem:[#allocation39_spill] sm:$0xff] %v3407_v30 }
 0x258   :  { %v3389_v44 = vpop.permute.xlu0 %1837 }
 0x259   :  { %2194 = vmatpush3.bf16.msra.mxu1 %v3174_v59  ;;  %v2421_v59 = vld [vmem:[%s3466_s5 + $0x48] ss:$16 sps:$4 sm:$0xff]   ;;  %s2460_s5 = smov [#allocation3]  }
 0x25a   :  { %s1955_s0 = sshll.u32 %s2460_s5, 4  ;;  %s1956_s0 = int_to_ptr.vmem [resolvable:$true] %s1955_s0 }
 0x25b   :  { %s2437_s19 = scalar_lea.vmem %s1956_s0, 16  ;;  %s2441_s20 = scalar_lea.vmem %s1956_s0, 32 }
 0x25c   :  { %1724 = vmatmul.mubr.bf16.vlgmr.msra.gmra.mxu1 %v2413_v49  ;;  %v3395_v23 = vpop.permute.xlu0 %1842  ;;  %p2438_p0 = scmp.ne.s32.totalorder %s1956_s0, %s2437_s19  ;;  %p2442_p1 = scmp.lt.s32.totalorder %s1956_s0, %s1956_s0 }
 0x25d   :  { %1731 = vmatprep.mubr.bf16.mxu1 %v2416_v10  ;;  %3547 = vst [vmem:[#allocation29_spill] sm:$0xff] %v3395_v23  ;;  %p2443_p2 = scmp.lt.s32.totalorder %s2441_s20, %s2437_s19 }
 0x25f   :  { %p2444_p3 = por %p2443_p2, %p2442_p1 }
 0x260   :  { %v3403_v43 = vpop.permute.xlu0 %1847 }
 0x261   :  { %3548 = vst [vmem:[#allocation31_spill] sm:$0xff] %v3403_v43  ;;  %p2445_p4 = pnand %p2444_p3, %p2438_p0 }
 0x264   :  { %1732 = vmatmul.mubr.bf16.gmra.mxu1 %v2418_v35  ;;  %v3409_v10 = vpop.permute.xlu0 %1852 }
 0x265   :  { %1739 = vmatprep.mubr.bf16.mxu1 %v2419_v47  ;;  %3551 = vst [vmem:[#allocation38_spill] sm:$0xff] %v3409_v10 }
 0x26c   :  { %1740 = vmatmul.mubr.bf16.gmra.mxu1 %v2421_v59 }
 0x26d   :  { %1747 = vmatprep.mubr.bf16.mxu1 %v2422_v55 }
 0x274   :  { %1748 = vmatmul.mubr.bf16.gmra.mxu1 %v2424_v48 }
 0x275   :  { %1755 = vmatprep.mubr.bf16.mxu1 %v2425_v22  ;;  %v3413_v22 = vpop.permute.xlu1 %1406 }
 0x276   :  { %3553 = vst [vmem:[#allocation43_spill] sm:$0xff] %v3413_v22 }
 0x27c   :  { %1756 = vmatmul.mubr.bf16.gmra.mxu1 %v2427_v4 }
 0x27d   :  { %1763 = vmatprep.mubr.bf16.mxu1 %v2428_v25 }
 0x284   :  { %1764 = vmatmul.mubr.bf16.gmra.mxu1 %v2430_v13 }
 0x285   :  { %1771 = vmatprep.mubr.bf16.mxu1 %v2431_v29 }
 0x28c   :  { %1772 = vmatmul.mubr.bf16.gmra.mxu1 %v2433_v3 }
 0x28d   :  { %1779 = vmatprep.mubr.bf16.mxu1 %v2434_v60  ;;  %v3417_v60 = vpop.permute.xlu0 %1857 }
 0x294   :  { %1780 = vmatmul.mubr.bf16.gmra.mxu1 %v2436_v1 }
 0x2dc   :  { %v2131_v53 = vpop.f32.mrf.mxu0 }
 0x2de   :  { %v2132_v34 = vpop.f32.mrf.mxu0 }
 0x2df   :  { %v2133_v48 = vadd.f32 %v2132_v34, %v2131_v53 }
 0x2e0   :  { %v2134_v54 = vpop.f32.mrf.mxu0 }
 0x2e1   :  { %v1629_v23 = vadd.f32 %v2133_v48, %v1357_v61 }
 0x2e2   :  { %v2135_v6 = vpop.f32.mrf.mxu0 }
 0x2e3   :  { %v2136_v59 = vadd.f32 %v2135_v6, %v2134_v54 }
 0x2e4   :  { %v2137_v36 = vpop.f32.mrf.mxu0 }
 0x2e5   :  { %v1632_v1 = vadd.f32 %v2136_v59, %v1362_v58 }
 0x2e6   :  { %v2138_v57 = vpop.f32.mrf.mxu0 }
 0x2e7   :  { %v2139_v4 = vadd.f32 %v2138_v57, %v2137_v36  ;;  %v3419_v36 = vpop.permute.xlu1 %1411 }
 0x2e8   :  { %v2140_v39 = vpop.f32.mrf.mxu0 }
 0x2e9   :  { %v1637_v30 = vadd.f32 %v2139_v4, %v1367_v52 }
 0x2ea   :  { %v2141_v63 = vpop.f32.mrf.mxu0 }
 0x2eb   :  { %v2142_v29 = vadd.f32 %v2141_v63, %v2140_v39 }
 0x2ec   :  { %v2143_v27 = vpop.f32.mrf.mxu0 }
 0x2ed   :  { %v1640_v34 = vadd.f32 %v2142_v29, %v1372_v50 }
 0x2ee   :  { %v2144_v11 = vpop.f32.mrf.mxu0 }
 0x2f0   :  { %v3359_v42 = vpop.f32.mrf.mxu0 }
 0x2f2   :  { %v3361_v15 = vpop.f32.mrf.mxu0 }
 0x2f3   :  { %v2148_v57 = vadd.f32 %v3361_v15, %v3359_v42 }
 0x2f4   :  { %v3363_v2 = vpop.f32.mrf.mxu0 }
 0x2f6   :  { %v3365_v5 = vpop.f32.mrf.mxu0 }
 0x2f7   :  { %v2151_v50 = vadd.f32 %v3365_v5, %v3363_v2 }
 0x2f8   :  { %v3369_v24 = vpop.f32.mrf.mxu0 }
 0x2fa   :  { %v3373_v8 = vpop.f32.mrf.mxu0 }
 0x2fc   :  { %v3377_v41 = vpop.f32.mrf.mxu0 }
 0x2fe   :  { %v3383_v0 = vpop.f32.mrf.mxu0 }
 0x2ff   :  { %v2157_v2 = vadd.f32 %v3383_v0, %v3377_v41 }
 0x300   :  { %v3387_v18 = vpop.f32.mrf.mxu0 }
 0x301   :  { %v1661_v4 = vadd.f32 %v2157_v2, %v3399_v20 }
 0x302   :  { %v3391_v21 = vpop.f32.mrf.mxu0 }
 0x304   :  { %v3397_v40 = vpop.f32.mrf.mxu0 }
 0x306   :  { %v3401_v9 = vpop.f32.mrf.mxu0 }
 0x308   :  { %v3405_v51 = vpop.f32.mrf.mxu0 }
 0x309   :  { %3549 = vst [vmem:[#allocation26_spill] sm:$0xff] %v3405_v51 }
 0x30a   :  { %v3411_v47 = vpop.f32.mrf.mxu0 }
 0x30b   :  { %3552 = vst [vmem:[#allocation34_spill] sm:$0xff] %v3411_v47  ;;  %v2145_v47 = vadd.f32 %v2144_v11, %v2143_v27 }
 0x30c   :  { %v3415_v3 = vpop.f32.mrf.mxu0 }
 0x30d   :  { %v1645_v61 = vadd.f32 %v2145_v47, %v3367_v19 }
 0x30e   :  { %v2168_v22 = vpop.f32.mrf.mxu0 }
 0x31c   :  { %v2195_v26 = vpop.f32.mrf.mxu1 }
 0x31e   :  { %v2196_v31 = vpop.f32.mrf.mxu1 }
 0x31f   :  { %v2197_v43 = vadd.f32 %v2196_v31, %v2195_v26  ;;  %v3423_v26 = vpop.permute.xlu0 %1862 }
 0x320   :  { %v2198_v62 = vpop.f32.mrf.mxu1 }
 0x321   :  { %v1726_v39 = vadd.f32 %v2197_v43, %v1629_v23  ;;  %v1417_v43 = vpop.permute.xlu1 %1416 }
 0x322   :  { %v2199_v32 = vpop.f32.mrf.mxu1 }
 0x323   :  { %v2200_v25 = vadd.f32 %v2199_v32, %v2198_v62  ;;  %v2170_v32 = vpop.f32.mrf.mxu0 }
 0x324   :  { %v2201_v17 = vpop.f32.mrf.mxu1 }
 0x325   :  { %v1729_v54 = vadd.f32 %v2200_v25, %v1632_v1  ;;  %v2171_v5 = vpop.f32.mrf.mxu0 }
 0x326   :  { %v2202_v28 = vpop.f32.mrf.mxu1 }
 0x327   :  { %v2203_v51 = vadd.f32 %v2202_v28, %v2201_v17  ;;  %v1789_v52 = vmax.f32 %v1729_v54, 0.0  ;;  %v1648_v17 = vadd.f32 %v2148_v57, %v3371_v56  ;;  %v1788_v28 = vmax.f32 %v1726_v39, 0.0 }
 0x328   :  { %v2204_v38 = vpop.f32.mrf.mxu1 }
 0x329   :  { %v1734_v63 = vadd.f32 %v2203_v51, %v1637_v30  ;;  %v1901_v19 = vmul.f32 %v3379_v37, %v1789_v52  ;;  %v1653_v30 = vadd.f32 %v2151_v50, %v3385_v7  ;;  %v3559_v52 = vld [vmem:[#allocation43_spill] sm:$0xff] }
 0x32a   :  { %v2205_v16 = vpop.f32.mrf.mxu1 }
 0x32b   :  { %v2206_v6 = vadd.f32 %v2205_v16, %v2204_v38  ;;  %v1790_v42 = vmax.f32 %v1734_v63, 0.0  ;;  %v2154_v38 = vadd.f32 %v3373_v8, %v3369_v24  ;;  %v1900_v24 = vmul.f32 %v3375_v33, %v1788_v28 }
 0x32c   :  { %v2207_v45 = vpop.f32.mrf.mxu1 }
 0x32d   :  { %v1737_v27 = vadd.f32 %v2206_v6, %v1640_v34  ;;  %v1902_v8 = vmul.f32 %v3381_v14, %v1790_v42  ;;  %v1656_v59 = vadd.f32 %v2154_v38, %v3393_v12  ;;  %v1916_v48 = vadd.f32 %v1901_v19, %v1900_v24  ;;  %v1422_v14 = vpop.permute.xlu1 %1421  ;;  %v3555_v12 = vld [vmem:[#allocation29_spill] sm:$0xff]  ;;  %v3557_v34 = vld [vmem:[#allocation34_spill] sm:$0xff] }
 0x32e   :  { %v2208_v46 = vpop.f32.mrf.mxu1 }
 0x32f   :  { %v2209_v62 = vadd.f32 %v2208_v46, %v2207_v45  ;;  %v1791_v45 = vmax.f32 %v1737_v27, 0.0  ;;  %v1917_v1 = vadd.f32 %v1916_v48, %v1902_v8 }
 0x330   :  { %v2210_v49 = vpop.f32.mrf.mxu1 }
 0x331   :  { %v1742_v15 = vadd.f32 %v2209_v62, %v1645_v61  ;;  %v1903_v41 = vmul.f32 %v3389_v44, %v1791_v45  ;;  %v2169_v62 = vadd.f32 %v2168_v22, %v3415_v3  ;;  %v1427_v45 = vpop.permute.xlu1 %1426  ;;  %v2172_v3 = vadd.f32 %v2171_v5, %v2170_v32 }
 0x332   :  { %v2211_v35 = vpop.f32.mrf.mxu1 }
 0x333   :  { %v2212_v11 = vadd.f32 %v2211_v35, %v2210_v49  ;;  %v3435_v49 = vpop.permute.xlu0 %1867  ;;  %v2160_v35 = vadd.f32 %v3391_v21, %v3387_v18  ;;  %v1792_v37 = vmax.f32 %v1742_v15, 0.0  ;;  %v2163_v18 = vadd.f32 %v3401_v9, %v3397_v40  ;;  %v2173_v21 = vpop.f32.mrf.mxu0  ;;  %v3558_v9 = vld [vmem:[#allocation31_spill] sm:$0xff] }
 0x334   :  { %v2213_v55 = vpop.f32.mrf.mxu1  ;;  %v1918_v40 = vadd.f32 %v1917_v1, %v1903_v41  ;;  %v1677_v22 = vadd.f32 %v2169_v62, %v1417_v43 }
 0x335   :  { %v1745_v46 = vadd.f32 %v2212_v11, %v1648_v17  ;;  %v1904_v54 = vmul.f32 %v3555_v12, %v1792_v37  ;;  %v1669_v27 = vadd.f32 %v2163_v18, %v3559_v52  ;;  %v2174_v11 = vpop.f32.mrf.mxu0 }
 0x336   :  { %v2214_v13 = vpop.f32.mrf.mxu1  ;;  %v2175_v48 = vadd.f32 %v2174_v11, %v2173_v21 }
 0x337   :  { %v2215_v16 = vadd.f32 %v2214_v13, %v2213_v55  ;;  %v1793_v0 = vmax.f32 %v1745_v46, 0.0  ;;  %v3554_v13 = vld [vmem:[#allocation39_spill] sm:$0xff]  ;;  %v1873_v20 = vpop.permute.xlu0 %1872  ;;  %v1919_v28 = vadd.f32 %v1918_v40, %v1904_v54 }
 0x338   :  { %v2216_v10 = vpop.f32.mrf.mxu1  ;;  %v1664_v29 = vadd.f32 %v2160_v35, %v3554_v13  ;;  %v1685_v1 = vadd.f32 %v2175_v48, %v1427_v45 }
 0x339   :  { %v1750_v55 = vadd.f32 %v2215_v16, %v1653_v30  ;;  %v2176_v30 = vpop.f32.mrf.mxu0 }
 0x33a   :  { %v2217_v53 = vpop.f32.mrf.mxu1 }
 0x33b   :  { %v2218_v56 = vadd.f32 %v2217_v53, %v2216_v10  ;;  %v3556_v53 = vld [vmem:[#allocation26_spill] sm:$0xff]  ;;  %v1794_v57 = vmax.f32 %v1750_v55, 0.0  ;;  %v1878_v8 = vpop.permute.xlu0 %1877  ;;  %v2177_v43 = vpop.f32.mrf.mxu0 }
 0x33c   :  { %v2219_v58 = vpop.f32.mrf.mxu1  ;;  %v2166_v44 = vadd.f32 %v3557_v34, %v3556_v53 }
 0x33d   :  { %v1753_v33 = vadd.f32 %v2218_v56, %v1656_v59 }
 0x33e   :  { %v2220_v31 = vpop.f32.mrf.mxu1  ;;  %v1672_v15 = vadd.f32 %v2166_v44, %v3419_v36 }
 0x33f   :  { %v2221_v7 = vadd.f32 %v2220_v31, %v2219_v58  ;;  %v1905_v58 = vmul.f32 %v3558_v9, %v1793_v0  ;;  %v1795_v31 = vmax.f32 %v1753_v33, 0.0 }
 0x340   :  { %v2222_v23 = vpop.f32.mrf.mxu1 }
 0x341   :  { %v1758_v39 = vadd.f32 %v2221_v7, %v1661_v4  ;;  %v1920_v46 = vadd.f32 %v1919_v28, %v1905_v58  ;;  %v1907_v2 = vmul.f32 %v3417_v60, %v1795_v31  ;;  %v1680_v7 = vadd.f32 %v2172_v3, %v1422_v14  ;;  %v1432_v60 = vpop.permute.xlu1 %1431 }
 0x342   :  { %v2223_v51 = vpop.f32.mrf.mxu1 }
 0x343   :  { %v2224_v25 = vadd.f32 %v2223_v51, %v2222_v23  ;;  %v3560_v23 = vld [vmem:[#allocation38_spill] sm:$0xff]  ;;  %v1796_v16 = vmax.f32 %v1758_v39, 0.0 }
 0x344   :  { %v2225_v47 = vpop.f32.mrf.mxu1  ;;  %v1906_v38 = vmul.f32 %v3560_v23, %v1794_v57 }
 0x345   :  { %v1761_v50 = vadd.f32 %v2224_v25, %v1664_v29  ;;  %v1908_v36 = vmul.f32 %v3423_v26, %v1796_v16  ;;  %v1883_v29 = vpop.permute.xlu0 %1882  ;;  %v2178_v26 = vadd.f32 %v2177_v43, %v2176_v30  ;;  %v1888_v57 = vpop.permute.xlu1 %1887 }
 0x346   :  { %v2226_v10 = vpop.f32.mrf.mxu1 }
 0x347   :  { %v2227_v63 = vadd.f32 %v2226_v10, %v2225_v47  ;;  %v1797_v56 = vmax.f32 %v1761_v50, 0.0  ;;  %v1921_v47 = vadd.f32 %v1920_v46, %v1906_v38  ;;  %v1688_v39 = vadd.f32 %v2178_v26, %v1432_v60 }
 0x348   :  { %v2228_v6 = vpop.f32.mrf.mxu1 }
 0x349   :  { %v1766_v19 = vadd.f32 %v2227_v63, %v1669_v27  ;;  %v1922_v32 = vadd.f32 %v1921_v47, %v1907_v2  ;;  %v1909_v5 = vmul.f32 %v3435_v49, %v1797_v56  ;;  %v1893_v58 = vpop.permute.xlu0 %1892  ;;  %v1898_v50 = vpop.permute.xlu1 %1897 }
 0x34a   :  { %v2229_v61 = vpop.f32.mrf.mxu1 }
 0x34b   :  { %v2230_v17 = vadd.f32 %v2229_v61, %v2228_v6  ;;  %v1798_v59 = vmax.f32 %v1766_v19, 0.0  ;;  %v1923_v18 = vadd.f32 %v1922_v32, %v1908_v36 }
 0x34c   :  { %v2231_v42 = vpop.f32.mrf.mxu1 }
 0x34d   :  { %v1769_v35 = vadd.f32 %v2230_v17, %v1672_v15  ;;  %v1910_v33 = vmul.f32 %v1873_v20, %v1798_v59  ;;  %v1924_v54 = vadd.f32 %v1923_v18, %v1909_v5  ;;  %v1941_v3 = vpop.permute.xlu0 %1940 }
 0x34e   :  { %v2232_v51 = vpop.f32.mrf.mxu1 }
 0x34f   :  { %v2233_v24 = vadd.f32 %v2232_v51, %v2231_v42  ;;  %v1799_v0 = vmax.f32 %v1769_v35, 0.0  ;;  %v1925_v34 = vadd.f32 %v1924_v54, %v1910_v33  ;;  %v1943_v42 = vlaneseq }
 0x350   :  { %v2234_v37 = vpop.f32.mrf.mxu1 }
 0x351   :  { %v1774_v55 = vadd.f32 %v2233_v24, %v1677_v22  ;;  %v1911_v14 = vmul.f32 %v1878_v8, %v1799_v0  ;;  %v1944_v38 = vshrl.u32 %v1943_v42, 7 }
 0x352   :  { %v2235_v41 = vpop.f32.mrf.mxu1 }
 0x353   :  { %v2236_v10 = vadd.f32 %v2235_v41, %v2234_v37  ;;  %v1800_v25 = vmax.f32 %v1774_v55, 0.0  ;;  %v1926_v62 = vadd.f32 %v1925_v34, %v1911_v14  ;;  %v1945_v45 = vsub.s32 0, %v1944_v38 }
 0x354   :  { %v2237_v4 = vpop.f32.mrf.mxu1 }
 0x355   :  { %v1777_v13 = vadd.f32 %v2236_v10, %v1680_v7  ;;  %v1912_v44 = vmul.f32 %v1883_v29, %v1800_v25  ;;  %v1946_v51 = vrot.slane %v1941_v3, %v1945_v45 }
 0x356   :  { %v2238_v12 = vpop.f32.mrf.mxu1 }
 0x357   :  { %v1801_v21 = vmax.f32 %v1777_v13, 0.0  ;;  %v2239_v6 = vadd.f32 %v2238_v12, %v2237_v4  ;;  %v1927_v61 = vadd.f32 %v1926_v62, %v1912_v44 }
 0x358   :  { %v2240_v53 = vpop.f32.mrf.mxu1 }
 0x359   :  { %v1782_v49 = vadd.f32 %v2239_v6, %v1685_v1  ;;  %v1913_v40 = vmul.f32 %v1888_v57, %v1801_v21 }
 0x35a   :  { %v2241_v63 = vpop.f32.mrf.mxu1 }
 0x35b   :  { %v1802_v20 = vmax.f32 %v1782_v49, 0.0  ;;  %v2242_v9 = vadd.f32 %v2241_v63, %v2240_v53  ;;  %v1928_v11 = vadd.f32 %v1927_v61, %v1913_v40 }
 0x35d   :  { %v1914_v52 = vmul.f32 %v1893_v58, %v1802_v20  ;;  %v1785_v27 = vadd.f32 %v2242_v9, %v1688_v39 }
 0x35f   :  { %v1803_v31 = vmax.f32 %v1785_v27, 0.0  ;;  %v1929_v17 = vadd.f32 %v1928_v11, %v1914_v52 }
 0x361   :  { %v1915_v28 = vmul.f32 %v1898_v50, %v1803_v31 }
 0x363   :  { %v1930_v15 = vadd.f32 %v1929_v17, %v1915_v28 }
 0x365   :  { %v1931_v23 = vrot.slane %v1930_v15, 4 }
 0x367   :  { %v1932_v16 = vadd.f32 %v1931_v23, %v1930_v15 }
 0x369   :  { %v1933_v19 = vrot.slane %v1932_v16, 2 }
 0x36b   :  { %v1934_v22 = vadd.f32 %v1933_v19, %v1932_v16 }
 0x36d   :  { %v1935_v46 = vrot.slane %v1934_v22, 1 }
 0x36f   :  { %v1936_v30 = vadd.f32 %v1935_v46, %v1934_v22 }
 0x371   :  { %v1947_v2 = vadd.f32 %v1946_v51, %v1936_v30 }
 0x373   :  { %1948 = vst [vmem:[#allocation3] sm:$0x1] %v1947_v2 }
 0x374   :  { %2448 = shalt.err (!%p2445_p4)
}
 0x375   :  { %1958 = dma.vmem_to_hbm [thread:$0]  %s1956_s0, 16, %s3470_s9, [#allocation4]  }
 0x376   :  { %2457 = dma.done.wait [#allocation4], 16  }
 0x377   :  { %2458 = vsyncadd [#allocation4], 4294967280 }
 0x378   :  { %1962 = vsyncpa [#allocation4], 1 }

</bundles_post_ra>
